<compile_context>
chip_gen: v7x
topology: tpu7x:2x2x1
jax: 0.10.0
libtpu: 0.0.40
codegen_flags: <defaults>
</compile_context>

<pallas_src>
import math

import jax
import jax.numpy as jnp
import numpy as np
from jax import lax
from jax.experimental import pallas as pl
from jax.experimental.pallas import tpu as pltpu


def _down_kernel(x_ref, w1_ref, b1_ref, w2_ref, b2_ref, out_ref,
                 pad1_ref, pad2_ref):
    """One (batch, row-tile) step: MaxPool(2) -> (conv3x3 -> BN -> ReLU) x 2.

    x_ref   : (Hh, 2, Wh, 2*Cin) bf16  full plane of one batch element; H is
              pre-split into (Hh, 2) and the W 2x2-pair folded into lanes.
    w*_ref  : (9*C, Cout) bf16   conv weights, BN scale folded in, K=(kh,kw,C).
    b*_ref  : (1, Cout)   f32    folded BN bias.
    out_ref : (TH, Wh, Cout) bf16  one row tile of the output.
    pad*_ref: bf16 VMEM scratch: zero-padded conv inputs for this tile only
              (1-px W pad + pooled / y1 row halo).
    """
    _, _, Wh, Cin2 = x_ref.shape
    Cin = Cin2 // 2
    TH, _, Cout = out_ref.shape

    t = pl.program_id(1)
    T = pl.num_programs(1)
    r0 = t * TH                      # first pooled / output row of this tile

    # ---- 2x2 max pool: unstrided lane-dense loads; max is exact in bf16 ----
    def pooled_rows(start, nrows):
        blk = x_ref[pl.ds(start, nrows), :, :, :]          # (nrows,2,Wh,2Cin)
        rmax = jnp.maximum(blk[:, 0], blk[:, 1])            # H pair  (VPU)
        pooled = jnp.maximum(rmax[..., :Cin], rmax[..., Cin:])  # W pair
        return pooled.astype(pad1_ref.dtype)

    # conv1 padded input: pooled rows [r0-2, r0+TH+2); out-of-image rows and
    # the 1-px W border are zero.  Borders are (re)zeroed every step so the
    # kernel stays correct under megacore sharding of the grid.
    zrow1 = jnp.zeros((2, Wh + 2, Cin), pad1_ref.dtype)
    zcol1 = jnp.zeros((TH + 4, 1, Cin), pad1_ref.dtype)
    pad1_ref[pl.ds(0, 2), :, :] = zrow1
    pad1_ref[pl.ds(TH + 2, 2), :, :] = zrow1
    pad1_ref[:, pl.ds(0, 1), :] = zcol1
    pad1_ref[:, pl.ds(Wh + 1, 1), :] = zcol1
    pad1_ref[pl.ds(2, TH), pl.ds(1, Wh), :] = pooled_rows(r0, TH)

    @pl.when(t > 0)
    def _():                                        # top halo (2 pooled rows)
        pad1_ref[pl.ds(0, 2), pl.ds(1, Wh), :] = pooled_rows(r0 - 2, 2)

    @pl.when(t < T - 1)
    def _():                                        # bottom halo (2 rows)
        pad1_ref[pl.ds(TH + 2, 2), pl.ds(1, Wh), :] = pooled_rows(r0 + TH, 2)

    # ---- 3x3 conv as ONE fat matmul (K = 9*C), bf16 MXU / f32 accumulate ----
    def conv_bn_relu(pad_ref, w_ref, b_ref, nrows):
        C = pad_ref.shape[-1]
        taps = [pad_ref[pl.ds(dy, nrows), pl.ds(dx, Wh), :]
                for dy in range(3) for dx in range(3)]
        patch = jnp.concatenate(taps, axis=-1).reshape(nrows * Wh, 9 * C)
        acc = jnp.dot(patch, w_ref[...], preferred_element_type=jnp.float32)
        return jnp.maximum(acc + b_ref[...], 0.0)   # BN bias + ReLU (f32)

    # conv1 -> BN1 -> ReLU: TH+2 rows of y1 (1-row halo on each side)
    y1 = conv_bn_relu(pad1_ref, w1_ref, b1_ref, TH + 2)
    pad2_ref[:, pl.ds(1, Wh), :] = (
        y1.reshape(TH + 2, Wh, Cout).astype(pad2_ref.dtype))

    # conv2 zero padding: W border always; H border only at image-edge tiles
    # (elsewhere the halo rows hold real y1 values).
    zcol2 = jnp.zeros((TH + 2, 1, Cout), pad2_ref.dtype)
    pad2_ref[:, pl.ds(0, 1), :] = zcol2
    pad2_ref[:, pl.ds(Wh + 1, 1), :] = zcol2

    @pl.when(t == 0)
    def _():
        pad2_ref[pl.ds(0, 1), :, :] = jnp.zeros((1, Wh + 2, Cout),
                                                pad2_ref.dtype)

    @pl.when(t == T - 1)
    def _():
        pad2_ref[pl.ds(TH + 1, 1), :, :] = jnp.zeros((1, Wh + 2, Cout),
                                                     pad2_ref.dtype)

    # conv2 -> BN2 -> ReLU -> store this row tile (lane-dense, Cout=128)
    y2 = conv_bn_relu(pad2_ref, w2_ref, b2_ref, TH)
    out_ref[...] = y2.reshape(TH, Wh, Cout).astype(out_ref.dtype)


def _fold_bn(gamma, beta, mean, var, eps=1e-5):
    scale = gamma / jnp.sqrt(var + eps)
    bias = beta - mean * scale
    return scale.astype(jnp.float32), bias.astype(jnp.float32)


def _prep_weight(w, scale):
    """PyTorch (Cout, Cin, 3, 3) + folded BN scale -> (9*Cin, Cout) bf16,
    K laid out as (kh, kw, cin)."""
    cout, cin = w.shape[0], w.shape[1]
    wf = w.astype(jnp.float32) * scale[:, None, None, None]
    wk = jnp.transpose(wf, (2, 3, 1, 0)).reshape(9 * cin, cout)
    return wk.astype(jnp.bfloat16)


def _pick_tile_rows(hh, target=16):
    if hh <= target:
        return hh
    for th in range(target, 1, -1):
        if hh % th == 0:
            return th
    return hh


def _vmem_limit_bytes():
    # Generation-aware scoped-VMEM limit (v7x has 64 MiB/TC vs 128 on v5e/v6e).
    try:
        cap = pltpu.get_tpu_info().vmem_capacity_bytes
    except Exception:
        cap = 64 * 1024 * 1024
    return min(cap // 2, 64 * 1024 * 1024)


def down_forward_nhwc(x_nhwc, w1, bn1, w2, bn2, tile_rows=None):
    """Down.forward in NHWC.  x: (N, H, W, Cin); w*: (Cout, Cin*, 3, 3);
    bn*: (gamma, beta, running_mean, running_var).  Returns bf16 NHWC output.
    Chained UNet stages should stay in this NHWC/bf16 form."""
    N, H, W, Cin = x_nhwc.shape
    assert H % 2 == 0 and W % 2 == 0, "MaxPool2d(2) path requires even H, W"
    Cout = w1.shape[0]
    Hh, Wh = H // 2, W // 2

    TH = tile_rows if tile_rows is not None else _pick_tile_rows(Hh)
    assert Hh % TH == 0 and (TH >= 2 or TH == Hh), "bad row-tile size"
    T = Hh // TH

    # bf16 at the HBM boundary; free layout-preserving reshape folds the 2x2
    # pooling window into (row pair, lane pair) for unstrided pooling loads.
    xv = x_nhwc.astype(jnp.bfloat16).reshape(N, Hh, 2, Wh, 2 * Cin)

    s1, b1 = _fold_bn(*bn1)
    s2, b2 = _fold_bn(*bn2)
    wk1 = _prep_weight(w1, s1)           # BN scale folded into bf16 weights
    wk2 = _prep_weight(w2, s2)
    b1 = b1.reshape(1, Cout)
    b2 = b2.reshape(1, Cout)

    return pl.pallas_call(
        _down_kernel,
        out_shape=jax.ShapeDtypeStruct((N, Hh, Wh, Cout), jnp.bfloat16),
        grid_spec=pltpu.PrefetchScalarGridSpec(
            num_scalar_prefetch=0,
            grid=(N, T),
            in_specs=[
                # one batch element's (reshaped) plane; constant in t, so it is
                # DMA'd once per n and revisited across row tiles.
                pl.BlockSpec((None, Hh, 2, Wh, 2 * Cin),
                             lambda n, t: (n, 0, 0, 0, 0)),
                pl.BlockSpec((9 * Cin, Cout), lambda n, t: (0, 0)),
                pl.BlockSpec((1, Cout), lambda n, t: (0, 0)),
                pl.BlockSpec((9 * Cout, Cout), lambda n, t: (0, 0)),
                pl.BlockSpec((1, Cout), lambda n, t: (0, 0)),
            ],
            out_specs=pl.BlockSpec((None, TH, Wh, Cout),
                                   lambda n, t: (n, t, 0, 0)),
            scratch_shapes=[
                pltpu.VMEM((TH + 4, Wh + 2, Cin), jnp.bfloat16),   # pad1
                pltpu.VMEM((TH + 2, Wh + 2, Cout), jnp.bfloat16),  # pad2
            ],
        ),
        compiler_params=pltpu.CompilerParams(
            dimension_semantics=("parallel", "arbitrary"),
            vmem_limit_bytes=_vmem_limit_bytes(),
        ),
    )(xv, wk1, b1, wk2, b2)


def down_forward(x_nchw, w1, bn1, w2, bn2, tile_rows=None):
    """PyTorch-parity wrapper: NCHW f32 in, NCHW f32 out."""
    x = jnp.transpose(x_nchw, (0, 2, 3, 1))
    out = down_forward_nhwc(x, w1, bn1, w2, bn2, tile_rows=tile_rows)
    return jnp.transpose(out, (0, 3, 1, 2)).astype(jnp.float32)


def _reference_down(x, w1, bn1, w2, bn2, eps=1e-5):
    """Plain-JAX reference: maxpool + (bf16-operand conv, BN scale folded into
    the bf16 weights exactly as the kernel does) + bias + ReLU."""
    p = lax.reduce_window(x, -jnp.inf, lax.max, (1, 1, 2, 2), (1, 1, 2, 2),
                          "VALID")

    def conv_bn_relu(h, w, bn):
        gamma, beta, mean, var = bn
        scale = gamma / jnp.sqrt(var + eps)
        bias = beta - mean * scale
        wf = (w * scale[:, None, None, None]).astype(jnp.bfloat16)
        y = lax.conv_general_dilated(
            h.astype(jnp.bfloat16), wf,
            window_strides=(1, 1), padding=((1, 1), (1, 1)),
            dimension_numbers=("NCHW", "OIHW", "NCHW"),
            preferred_element_type=jnp.float32)
        return jnp.maximum(y + bias.reshape(1, -1, 1, 1), 0.0)

    h = conv_bn_relu(p, w1, bn1)
    return conv_bn_relu(h, w2, bn2)


if __name__ == "__main__":
    key = jax.random.PRNGKey(0)
    k_x, k_w1, k_w2, k_bn = jax.random.split(key, 4)

    # Down(64 -> 128) stage of UNet(features=[32, 64, 128, 256]) at a small
    # spatial size.  Cout=128 keeps the output lane-dense.
    N, Cin, H, W = 2, 64, 16, 16
    Cout = 128

    x = jax.random.normal(k_x, (N, Cin, H, W), dtype=jnp.float32)

    # Kaiming-normal, mode='fan_out', nonlinearity='relu' (fan_out = Cout*3*3)
    std = math.sqrt(2.0 / (Cout * 3 * 3))
    w1 = jax.random.normal(k_w1, (Cout, Cin, 3, 3), dtype=jnp.float32) * std
    w2 = jax.random.normal(k_w2, (Cout, Cout, 3, 3), dtype=jnp.float32) * std

    # Eval-mode BatchNorm2d parameters / running statistics (non-trivial).
    kbn = jax.random.split(k_bn, 8)

    def make_bn(kg, kb, km, kv):
        gamma = 1.0 + 0.2 * jax.random.normal(kg, (Cout,), jnp.float32)
        beta = 0.1 * jax.random.normal(kb, (Cout,), jnp.float32)
        mean = 0.1 * jax.random.normal(km, (Cout,), jnp.float32)
        var = 1.0 + 0.5 * jax.random.uniform(kv, (Cout,), jnp.float32)
        return gamma, beta, mean, var

    bn1 = make_bn(*kbn[:4])
    bn2 = make_bn(*kbn[4:])

    # tile_rows=4 -> two row tiles per batch element, exercising the halo path.
    out = jax.block_until_ready(down_forward(x, w1, bn1, w2, bn2, tile_rows=4))
    ref = jax.block_until_ready(_reference_down(x, w1, bn1, w2, bn2))

    # bf16 MXU operands + bf16 activation storage in both paths; residual
    # difference is f32 accumulation order and the final bf16 output rounding.
    np.testing.assert_allclose(np.asarray(out), np.asarray(ref),
                               rtol=2e-2, atol=2e-2)
    assert out.shape == (N, Cout, H // 2, W // 2)
    print("KERNEL_OK")
</pallas_src>

<mosaic_0001>
module attributes {stable_mosaic.version = 11 : i64} {
  func.func @_down_kernel(%arg0: i32, %arg1: i32, %arg2: memref<1x8x2x8x128xbf16, #tpu.memory_space<vmem>>, %arg3: memref<576x128xbf16, #tpu.memory_space<vmem>>, %arg4: memref<1x128xf32, #tpu.memory_space<vmem>>, %arg5: memref<1152x128xbf16, #tpu.memory_space<vmem>>, %arg6: memref<1x128xf32, #tpu.memory_space<vmem>>, %arg7: memref<1x4x8x128xbf16, #tpu.memory_space<vmem>>, %arg8: memref<8x10x64xbf16, #tpu.memory_space<vmem>>, %arg9: memref<6x10x128xbf16, #tpu.memory_space<vmem>>) attributes {dimension_semantics = [#tpu.dimension_semantics<parallel>, #tpu.dimension_semantics<arbitrary>], iteration_bounds = array<i64: 2, 2>, scalar_prefetch = 0 : i64, scratch_operands = 2 : i64, tpu.core_type = #tpu.core_type<tc>, window_params = [{transform_indices = @transform_0, window_bounds = array<i64: 1, 8, 2, 8, 128>}, {pipeline_mode = #tpu.pipeline_mode<synchronous>, transform_indices = @transform_1, window_bounds = array<i64: 576, 128>}, {pipeline_mode = #tpu.pipeline_mode<synchronous>, transform_indices = @transform_2, window_bounds = array<i64: 1, 128>}, {pipeline_mode = #tpu.pipeline_mode<synchronous>, transform_indices = @transform_3, window_bounds = array<i64: 1152, 128>}, {pipeline_mode = #tpu.pipeline_mode<synchronous>, transform_indices = @transform_4, window_bounds = array<i64: 1, 128>}, {transform_indices = @transform_5, window_bounds = array<i64: 1, 4, 8, 128>}]} {
    %c4_i32 = arith.constant 4 : i32
    %0 = arith.muli %arg1, %c4_i32 : i32
    %cst = arith.constant 0.000000e+00 : bf16
    %1 = vector.broadcast %cst : bf16 to vector<2x10x64xbf16>
    %cst_0 = arith.constant 0.000000e+00 : bf16
    %2 = vector.broadcast %cst_0 : bf16 to vector<8x1x64xbf16>
    %c0 = arith.constant 0 : index
    %c0_1 = arith.constant 0 : index
    %c0_2 = arith.constant 0 : index
    %3 = vector.load %arg8[%c0, %c0_1, %c0_2] : memref<8x10x64xbf16, #tpu.memory_space<vmem>>, vector<2x10x64xbf16>
    tpu.vector_store %arg8[%c0, %c0_1, %c0_2], %1 {strides = array<i32>} : memref<8x10x64xbf16, #tpu.memory_space<vmem>>, vector<2x10x64xbf16>,
    %c6 = arith.constant 6 : index
    %c0_3 = arith.constant 0 : index
    %c0_4 = arith.constant 0 : index
    %4 = vector.load %arg8[%c6, %c0_3, %c0_4] : memref<8x10x64xbf16, #tpu.memory_space<vmem>>, vector<2x10x64xbf16>
    tpu.vector_store %arg8[%c6, %c0_3, %c0_4], %1 {strides = array<i32>} : memref<8x10x64xbf16, #tpu.memory_space<vmem>>, vector<2x10x64xbf16>,
    %c0_5 = arith.constant 0 : index
    %c0_6 = arith.constant 0 : index
    %c0_7 = arith.constant 0 : index
    %5 = vector.load %arg8[%c0_5, %c0_6, %c0_7] : memref<8x10x64xbf16, #tpu.memory_space<vmem>>, vector<8x1x64xbf16>
    tpu.vector_store %arg8[%c0_5, %c0_6, %c0_7], %2 {strides = array<i32>} : memref<8x10x64xbf16, #tpu.memory_space<vmem>>, vector<8x1x64xbf16>,
    %c0_8 = arith.constant 0 : index
    %c9 = arith.constant 9 : index
    %c0_9 = arith.constant 0 : index
    %6 = vector.load %arg8[%c0_8, %c9, %c0_9] : memref<8x10x64xbf16, #tpu.memory_space<vmem>>, vector<8x1x64xbf16>
    tpu.vector_store %arg8[%c0_8, %c9, %c0_9], %2 {strides = array<i32>} : memref<8x10x64xbf16, #tpu.memory_space<vmem>>, vector<8x1x64xbf16>,
    %c0_10 = arith.constant 0 : index
    %7 = arith.index_cast %0 : i32 to index
    %c0_11 = arith.constant 0 : index
    %c0_12 = arith.constant 0 : index
    %c0_13 = arith.constant 0 : index
    %8 = vector.load %arg2[%c0_10, %7, %c0_11, %c0_12, %c0_13] : memref<1x8x2x8x128xbf16, #tpu.memory_space<vmem>>, vector<1x4x2x8x128xbf16>
    %9 = vector.shape_cast %8 : vector<1x4x2x8x128xbf16> to vector<4x2x8x128xbf16>
    %10 = vector.extract_strided_slice %9 {offsets = [0, 0, 0, 0], sizes = [4, 1, 8, 128], strides = [1, 1, 1, 1]} : vector<4x2x8x128xbf16> to vector<4x1x8x128xbf16>
    %11 = vector.shape_cast %10 : vector<4x1x8x128xbf16> to vector<4x8x128xbf16>
    %12 = vector.extract_strided_slice %9 {offsets = [0, 1, 0, 0], sizes = [4, 1, 8, 128], strides = [1, 1, 1, 1]} : vector<4x2x8x128xbf16> to vector<4x1x8x128xbf16>
    %13 = vector.shape_cast %12 : vector<4x1x8x128xbf16> to vector<4x8x128xbf16>
    %14 = arith.maximumf %11, %13 : vector<4x8x128xbf16>
    %15 = vector.extract_strided_slice %14 {offsets = [0, 0, 0], sizes = [4, 8, 64], strides = [1, 1, 1]} : vector<4x8x128xbf16> to vector<4x8x64xbf16>
    %16 = vector.extract_strided_slice %14 {offsets = [0, 0, 64], sizes = [4, 8, 64], strides = [1, 1, 1]} : vector<4x8x128xbf16> to vector<4x8x64xbf16>
    %17 = arith.maximumf %15, %16 : vector<4x8x64xbf16>
    %c2 = arith.constant 2 : index
    %c1 = arith.constant 1 : index
    %c0_14 = arith.constant 0 : index
    %18 = vector.load %arg8[%c2, %c1, %c0_14] : memref<8x10x64xbf16, #tpu.memory_space<vmem>>, vector<4x8x64xbf16>
    tpu.vector_store %arg8[%c2, %c1, %c0_14], %17 {strides = array<i32>} : memref<8x10x64xbf16, #tpu.memory_space<vmem>>, vector<4x8x64xbf16>,
    %c0_i32 = arith.constant 0 : i32
    %19 = arith.cmpi sgt, %arg1, %c0_i32 : i32
    %20 = arith.extui %19 : i1 to i32
    %c0_i32_15 = arith.constant 0 : i32
    %21 = arith.cmpi ne, %20, %c0_i32_15 : i32
    scf.if %21 {
      %c2_i32 = arith.constant 2 : i32
      %78 = arith.subi %0, %c2_i32 : i32
      %c0_101 = arith.constant 0 : index
      %79 = arith.index_cast %78 : i32 to index
      %c0_102 = arith.constant 0 : index
      %c0_103 = arith.constant 0 : index
      %c0_104 = arith.constant 0 : index
      %80 = vector.load %arg2[%c0_101, %79, %c0_102, %c0_103, %c0_104] : memref<1x8x2x8x128xbf16, #tpu.memory_space<vmem>>, vector<1x2x2x8x128xbf16>
      %81 = vector.shape_cast %80 : vector<1x2x2x8x128xbf16> to vector<2x2x8x128xbf16>
      %82 = vector.extract_strided_slice %81 {offsets = [0, 0, 0, 0], sizes = [2, 1, 8, 128], strides = [1, 1, 1, 1]} : vector<2x2x8x128xbf16> to vector<2x1x8x128xbf16>
      %83 = vector.shape_cast %82 : vector<2x1x8x128xbf16> to vector<2x8x128xbf16>
      %84 = vector.extract_strided_slice %81 {offsets = [0, 1, 0, 0], sizes = [2, 1, 8, 128], strides = [1, 1, 1, 1]} : vector<2x2x8x128xbf16> to vector<2x1x8x128xbf16>
      %85 = vector.shape_cast %84 : vector<2x1x8x128xbf16> to vector<2x8x128xbf16>
      %86 = arith.maximumf %83, %85 : vector<2x8x128xbf16>
      %87 = vector.extract_strided_slice %86 {offsets = [0, 0, 0], sizes = [2, 8, 64], strides = [1, 1, 1]} : vector<2x8x128xbf16> to vector<2x8x64xbf16>
      %88 = vector.extract_strided_slice %86 {offsets = [0, 0, 64], sizes = [2, 8, 64], strides = [1, 1, 1]} : vector<2x8x128xbf16> to vector<2x8x64xbf16>
      %89 = arith.maximumf %87, %88 : vector<2x8x64xbf16>
      %c0_105 = arith.constant 0 : index
      %c1_106 = arith.constant 1 : index
      %c0_107 = arith.constant 0 : index
      %90 = vector.load %arg8[%c0_105, %c1_106, %c0_107] : memref<8x10x64xbf16, #tpu.memory_space<vmem>>, vector<2x8x64xbf16>
      tpu.vector_store %arg8[%c0_105, %c1_106, %c0_107], %89 {strides = array<i32>} : memref<8x10x64xbf16, #tpu.memory_space<vmem>>, vector<2x8x64xbf16>,
    } else {
    }
    %c1_i32 = arith.constant 1 : i32
    %22 = arith.cmpi slt, %arg1, %c1_i32 : i32
    %23 = arith.extui %22 : i1 to i32
    %c0_i32_16 = arith.constant 0 : i32
    %24 = arith.cmpi ne, %23, %c0_i32_16 : i32
    scf.if %24 {
      %c4_i32_101 = arith.constant 4 : i32
      %78 = arith.addi %0, %c4_i32_101 : i32
      %c0_102 = arith.constant 0 : index
      %79 = arith.index_cast %78 : i32 to index
      %c0_103 = arith.constant 0 : index
      %c0_104 = arith.constant 0 : index
      %c0_105 = arith.constant 0 : index
      %80 = vector.load %arg2[%c0_102, %79, %c0_103, %c0_104, %c0_105] : memref<1x8x2x8x128xbf16, #tpu.memory_space<vmem>>, vector<1x2x2x8x128xbf16>
      %81 = vector.shape_cast %80 : vector<1x2x2x8x128xbf16> to vector<2x2x8x128xbf16>
      %82 = vector.extract_strided_slice %81 {offsets = [0, 0, 0, 0], sizes = [2, 1, 8, 128], strides = [1, 1, 1, 1]} : vector<2x2x8x128xbf16> to vector<2x1x8x128xbf16>
      %83 = vector.shape_cast %82 : vector<2x1x8x128xbf16> to vector<2x8x128xbf16>
      %84 = vector.extract_strided_slice %81 {offsets = [0, 1, 0, 0], sizes = [2, 1, 8, 128], strides = [1, 1, 1, 1]} : vector<2x2x8x128xbf16> to vector<2x1x8x128xbf16>
      %85 = vector.shape_cast %84 : vector<2x1x8x128xbf16> to vector<2x8x128xbf16>
      %86 = arith.maximumf %83, %85 : vector<2x8x128xbf16>
      %87 = vector.extract_strided_slice %86 {offsets = [0, 0, 0], sizes = [2, 8, 64], strides = [1, 1, 1]} : vector<2x8x128xbf16> to vector<2x8x64xbf16>
      %88 = vector.extract_strided_slice %86 {offsets = [0, 0, 64], sizes = [2, 8, 64], strides = [1, 1, 1]} : vector<2x8x128xbf16> to vector<2x8x64xbf16>
      %89 = arith.maximumf %87, %88 : vector<2x8x64xbf16>
      %c6_106 = arith.constant 6 : index
      %c1_107 = arith.constant 1 : index
      %c0_108 = arith.constant 0 : index
      %90 = vector.load %arg8[%c6_106, %c1_107, %c0_108] : memref<8x10x64xbf16, #tpu.memory_space<vmem>>, vector<2x8x64xbf16>
      tpu.vector_store %arg8[%c6_106, %c1_107, %c0_108], %89 {strides = array<i32>} : memref<8x10x64xbf16, #tpu.memory_space<vmem>>, vector<2x8x64xbf16>,
    } else {
    }
    %c0_17 = arith.constant 0 : index
    %c0_18 = arith.constant 0 : index
    %c0_19 = arith.constant 0 : index
    %25 = vector.load %arg8[%c0_17, %c0_18, %c0_19] : memref<8x10x64xbf16, #tpu.memory_space<vmem>>, vector<6x8x64xbf16>
    %c0_20 = arith.constant 0 : index
    %c1_21 = arith.constant 1 : index
    %c0_22 = arith.constant 0 : index
    %26 = vector.load %arg8[%c0_20, %c1_21, %c0_22] : memref<8x10x64xbf16, #tpu.memory_space<vmem>>, vector<6x8x64xbf16>
    %c0_23 = arith.constant 0 : index
    %c2_24 = arith.constant 2 : index
    %c0_25 = arith.constant 0 : index
    %27 = vector.load %arg8[%c0_23, %c2_24, %c0_25] : memref<8x10x64xbf16, #tpu.memory_space<vmem>>, vector<6x8x64xbf16>
    %c1_26 = arith.constant 1 : index
    %c0_27 = arith.constant 0 : index
    %c0_28 = arith.constant 0 : index
    %28 = vector.load %arg8[%c1_26, %c0_27, %c0_28] : memref<8x10x64xbf16, #tpu.memory_space<vmem>>, vector<6x8x64xbf16>
    %c1_29 = arith.constant 1 : index
    %c1_30 = arith.constant 1 : index
    %c0_31 = arith.constant 0 : index
    %29 = vector.load %arg8[%c1_29, %c1_30, %c0_31] : memref<8x10x64xbf16, #tpu.memory_space<vmem>>, vector<6x8x64xbf16>
    %c1_32 = arith.constant 1 : index
    %c2_33 = arith.constant 2 : index
    %c0_34 = arith.constant 0 : index
    %30 = vector.load %arg8[%c1_32, %c2_33, %c0_34] : memref<8x10x64xbf16, #tpu.memory_space<vmem>>, vector<6x8x64xbf16>
    %c2_35 = arith.constant 2 : index
    %c0_36 = arith.constant 0 : index
    %c0_37 = arith.constant 0 : index
    %31 = vector.load %arg8[%c2_35, %c0_36, %c0_37] : memref<8x10x64xbf16, #tpu.memory_space<vmem>>, vector<6x8x64xbf16>
    %c2_38 = arith.constant 2 : index
    %c1_39 = arith.constant 1 : index
    %c0_40 = arith.constant 0 : index
    %32 = vector.load %arg8[%c2_38, %c1_39, %c0_40] : memref<8x10x64xbf16, #tpu.memory_space<vmem>>, vector<6x8x64xbf16>
    %c2_41 = arith.constant 2 : index
    %c2_42 = arith.constant 2 : index
    %c0_43 = arith.constant 0 : index
    %33 = vector.load %arg8[%c2_41, %c2_42, %c0_43] : memref<8x10x64xbf16, #tpu.memory_space<vmem>>, vector<6x8x64xbf16>
    %34 = tpu.concatenate %25, %26, %27, %28, %29, %30, %31, %32, %33 in 2 : vector<6x8x64xbf16>, vector<6x8x64xbf16>, vector<6x8x64xbf16>, vector<6x8x64xbf16>, vector<6x8x64xbf16>, vector<6x8x64xbf16>, vector<6x8x64xbf16>, vector<6x8x64xbf16>, vector<6x8x64xbf16> -> vector<6x8x576xbf16>
    %35 = vector.shape_cast %34 : vector<6x8x576xbf16> to vector<48x576xbf16>
    %c0_44 = arith.constant 0 : index
    %c0_45 = arith.constant 0 : index
    %36 = vector.load %arg3[%c0_44, %c0_45] : memref<576x128xbf16, #tpu.memory_space<vmem>>, vector<576x128xbf16>
    %cst_46 = arith.constant dense<0.000000e+00> : vector<48x128xf32>
    %37 = tpu.matmul %35, %36, %cst_46 {dimension_numbers = #tpu.dot_dimension_numbers<[1], [0], [0], [1], [0, 0, 1, 1], [], []>} : vector<48x576xbf16>, vector<576x128xbf16>, vector<48x128xf32> -> vector<48x128xf32>
    %c0_47 = arith.constant 0 : index
    %c0_48 = arith.constant 0 : index
    %38 = vector.load %arg4[%c0_47, %c0_48] : memref<1x128xf32, #tpu.memory_space<vmem>>, vector<1x128xf32>
    %39 = vector.broadcast %38 : vector<1x128xf32> to vector<48x128xf32>
    %40 = arith.addf %37, %39 : vector<48x128xf32>
    %cst_49 = arith.constant 0.000000e+00 : f32
    %41 = vector.broadcast %cst_49 : f32 to vector<48x128xf32>
    %42 = arith.maximumf %40, %41 : vector<48x128xf32>
    %43 = vector.shape_cast %42 : vector<48x128xf32> to vector<6x8x128xf32>
    %44 = arith.truncf %43 : vector<6x8x128xf32> to vector<6x8x128xbf16>
    %c0_50 = arith.constant 0 : index
    %c1_51 = arith.constant 1 : index
    %c0_52 = arith.constant 0 : index
    %45 = vector.load %arg9[%c0_50, %c1_51, %c0_52] : memref<6x10x128xbf16, #tpu.memory_space<vmem>>, vector<6x8x128xbf16>
    tpu.vector_store %arg9[%c0_50, %c1_51, %c0_52], %44 {strides = array<i32>} : memref<6x10x128xbf16, #tpu.memory_space<vmem>>, vector<6x8x128xbf16>,
    %cst_53 = arith.constant 0.000000e+00 : bf16
    %46 = vector.broadcast %cst_53 : bf16 to vector<6x1x128xbf16>
    %c0_54 = arith.constant 0 : index
    %c0_55 = arith.constant 0 : index
    %c0_56 = arith.constant 0 : index
    %47 = vector.load %arg9[%c0_54, %c0_55, %c0_56] : memref<6x10x128xbf16, #tpu.memory_space<vmem>>, vector<6x1x128xbf16>
    tpu.vector_store %arg9[%c0_54, %c0_55, %c0_56], %46 {strides = array<i32>} : memref<6x10x128xbf16, #tpu.memory_space<vmem>>, vector<6x1x128xbf16>,
    %c0_57 = arith.constant 0 : index
    %c9_58 = arith.constant 9 : index
    %c0_59 = arith.constant 0 : index
    %48 = vector.load %arg9[%c0_57, %c9_58, %c0_59] : memref<6x10x128xbf16, #tpu.memory_space<vmem>>, vector<6x1x128xbf16>
    tpu.vector_store %arg9[%c0_57, %c9_58, %c0_59], %46 {strides = array<i32>} : memref<6x10x128xbf16, #tpu.memory_space<vmem>>, vector<6x1x128xbf16>,
    %c0_i32_60 = arith.constant 0 : i32
    %49 = arith.cmpi eq, %arg1, %c0_i32_60 : i32
    %50 = arith.extui %49 : i1 to i32
    %c0_i32_61 = arith.constant 0 : i32
    %51 = arith.cmpi ne, %50, %c0_i32_61 : i32
    scf.if %51 {
      %cst_101 = arith.constant 0.000000e+00 : bf16
      %78 = vector.broadcast %cst_101 : bf16 to vector<1x10x128xbf16>
      %c0_102 = arith.constant 0 : index
      %c0_103 = arith.constant 0 : index
      %c0_104 = arith.constant 0 : index
      %79 = vector.load %arg9[%c0_102, %c0_103, %c0_104] : memref<6x10x128xbf16, #tpu.memory_space<vmem>>, vector<1x10x128xbf16>
      tpu.vector_store %arg9[%c0_102, %c0_103, %c0_104], %78 {strides = array<i32>} : memref<6x10x128xbf16, #tpu.memory_space<vmem>>, vector<1x10x128xbf16>,
    } else {
    }
    %c1_i32_62 = arith.constant 1 : i32
    %52 = arith.cmpi eq, %arg1, %c1_i32_62 : i32
    %53 = arith.extui %52 : i1 to i32
    %c0_i32_63 = arith.constant 0 : i32
    %54 = arith.cmpi ne, %53, %c0_i32_63 : i32
    scf.if %54 {
      %cst_101 = arith.constant 0.000000e+00 : bf16
      %78 = vector.broadcast %cst_101 : bf16 to vector<1x10x128xbf16>
      %c5 = arith.constant 5 : index
      %c0_102 = arith.constant 0 : index
      %c0_103 = arith.constant 0 : index
      %79 = vector.load %arg9[%c5, %c0_102, %c0_103] : memref<6x10x128xbf16, #tpu.memory_space<vmem>>, vector<1x10x128xbf16>
      tpu.vector_store %arg9[%c5, %c0_102, %c0_103], %78 {strides = array<i32>} : memref<6x10x128xbf16, #tpu.memory_space<vmem>>, vector<1x10x128xbf16>,
    } else {
    }
    %c0_64 = arith.constant 0 : index
    %c0_65 = arith.constant 0 : index
    %c0_66 = arith.constant 0 : index
    %55 = vector.load %arg9[%c0_64, %c0_65, %c0_66] : memref<6x10x128xbf16, #tpu.memory_space<vmem>>, vector<4x8x128xbf16>
    %c0_67 = arith.constant 0 : index
    %c1_68 = arith.constant 1 : index
    %c0_69 = arith.constant 0 : index
    %56 = vector.load %arg9[%c0_67, %c1_68, %c0_69] : memref<6x10x128xbf16, #tpu.memory_space<vmem>>, vector<4x8x128xbf16>
    %c0_70 = arith.constant 0 : index
    %c2_71 = arith.constant 2 : index
    %c0_72 = arith.constant 0 : index
    %57 = vector.load %arg9[%c0_70, %c2_71, %c0_72] : memref<6x10x128xbf16, #tpu.memory_space<vmem>>, vector<4x8x128xbf16>
    %c1_73 = arith.constant 1 : index
    %c0_74 = arith.constant 0 : index
    %c0_75 = arith.constant 0 : index
    %58 = vector.load %arg9[%c1_73, %c0_74, %c0_75] : memref<6x10x128xbf16, #tpu.memory_space<vmem>>, vector<4x8x128xbf16>
    %c1_76 = arith.constant 1 : index
    %c1_77 = arith.constant 1 : index
    %c0_78 = arith.constant 0 : index
    %59 = vector.load %arg9[%c1_76, %c1_77, %c0_78] : memref<6x10x128xbf16, #tpu.memory_space<vmem>>, vector<4x8x128xbf16>
    %c1_79 = arith.constant 1 : index
    %c2_80 = arith.constant 2 : index
    %c0_81 = arith.constant 0 : index
    %60 = vector.load %arg9[%c1_79, %c2_80, %c0_81] : memref<6x10x128xbf16, #tpu.memory_space<vmem>>, vector<4x8x128xbf16>
    %c2_82 = arith.constant 2 : index
    %c0_83 = arith.constant 0 : index
    %c0_84 = arith.constant 0 : index
    %61 = vector.load %arg9[%c2_82, %c0_83, %c0_84] : memref<6x10x128xbf16, #tpu.memory_space<vmem>>, vector<4x8x128xbf16>
    %c2_85 = arith.constant 2 : index
    %c1_86 = arith.constant 1 : index
    %c0_87 = arith.constant 0 : index
    %62 = vector.load %arg9[%c2_85, %c1_86, %c0_87] : memref<6x10x128xbf16, #tpu.memory_space<vmem>>, vector<4x8x128xbf16>
    %c2_88 = arith.constant 2 : index
    %c2_89 = arith.constant 2 : index
    %c0_90 = arith.constant 0 : index
    %63 = vector.load %arg9[%c2_88, %c2_89, %c0_90] : memref<6x10x128xbf16, #tpu.memory_space<vmem>>, vector<4x8x128xbf16>
    %64 = tpu.concatenate %55, %56, %57, %58, %59, %60, %61, %62, %63 in 2 : vector<4x8x128xbf16>, vector<4x8x128xbf16>, vector<4x8x128xbf16>, vector<4x8x128xbf16>, vector<4x8x128xbf16>, vector<4x8x128xbf16>, vector<4x8x128xbf16>, vector<4x8x128xbf16>, vector<4x8x128xbf16> -> vector<4x8x1152xbf16>
    %65 = vector.shape_cast %64 : vector<4x8x1152xbf16> to vector<32x1152xbf16>
    %c0_91 = arith.constant 0 : index
    %c0_92 = arith.constant 0 : index
    %66 = vector.load %arg5[%c0_91, %c0_92] : memref<1152x128xbf16, #tpu.memory_space<vmem>>, vector<1152x128xbf16>
    %cst_93 = arith.constant dense<0.000000e+00> : vector<32x128xf32>
    %67 = tpu.matmul %65, %66, %cst_93 {dimension_numbers = #tpu.dot_dimension_numbers<[1], [0], [0], [1], [0, 0, 1, 1], [], []>} : vector<32x1152xbf16>, vector<1152x128xbf16>, vector<32x128xf32> -> vector<32x128xf32>
    %c0_94 = arith.constant 0 : index
    %c0_95 = arith.constant 0 : index
    %68 = vector.load %arg6[%c0_94, %c0_95] : memref<1x128xf32, #tpu.memory_space<vmem>>, vector<1x128xf32>
    %69 = vector.broadcast %68 : vector<1x128xf32> to vector<32x128xf32>
    %70 = arith.addf %67, %69 : vector<32x128xf32>
    %cst_96 = arith.constant 0.000000e+00 : f32
    %71 = vector.broadcast %cst_96 : f32 to vector<32x128xf32>
    %72 = arith.maximumf %70, %71 : vector<32x128xf32>
    %73 = vector.shape_cast %72 : vector<32x128xf32> to vector<4x8x128xf32>
    %74 = arith.truncf %73 : vector<4x8x128xf32> to vector<4x8x128xbf16>
    %c0_97 = arith.constant 0 : index
    %c0_98 = arith.constant 0 : index
    %c0_99 = arith.constant 0 : index
    %c0_100 = arith.constant 0 : index
    %75 = vector.load %arg7[%c0_97, %c0_98, %c0_99, %c0_100] : memref<1x4x8x128xbf16, #tpu.memory_space<vmem>>, vector<1x4x8x128xbf16>
    %76 = vector.shape_cast %75 : vector<1x4x8x128xbf16> to vector<4x8x128xbf16>
    %77 = vector.shape_cast %74 : vector<4x8x128xbf16> to vector<1x4x8x128xbf16>
    tpu.vector_store %arg7[%c0_97, %c0_98, %c0_99, %c0_100], %77 {strides = array<i32>} : memref<1x4x8x128xbf16, #tpu.memory_space<vmem>>, vector<1x4x8x128xbf16>,
    return
  }
  func.func @transform_0(%arg0: i32, %arg1: i32) -> (i32, i32, i32, i32, i32) {
    %c0_i32 = arith.constant 0 : i32
    %c0_i32_0 = arith.constant 0 : i32
    %c0_i32_1 = arith.constant 0 : i32
    %c0_i32_2 = arith.constant 0 : i32
    %c0_i32_3 = arith.constant 0 : i32
    return %arg0, %c0_i32, %c0_i32_0, %c0_i32_1, %c0_i32_2 : i32, i32, i32, i32, i32
  }
  func.func @transform_1(%arg0: i32, %arg1: i32) -> (i32, i32) {
    %c0_i32 = arith.constant 0 : i32
    %c0_i32_0 = arith.constant 0 : i32
    %c0_i32_1 = arith.constant 0 : i32
    return %c0_i32, %c0_i32_0 : i32, i32
  }
  func.func @transform_2(%arg0: i32, %arg1: i32) -> (i32, i32) {
    %c0_i32 = arith.constant 0 : i32
    %c0_i32_0 = arith.constant 0 : i32
    %c0_i32_1 = arith.constant 0 : i32
    return %c0_i32, %c0_i32_0 : i32, i32
  }
  func.func @transform_3(%arg0: i32, %arg1: i32) -> (i32, i32) {
    %c0_i32 = arith.constant 0 : i32
    %c0_i32_0 = arith.constant 0 : i32
    %c0_i32_1 = arith.constant 0 : i32
    return %c0_i32, %c0_i32_0 : i32, i32
  }
  func.func @transform_4(%arg0: i32, %arg1: i32) -> (i32, i32) {
    %c0_i32 = arith.constant 0 : i32
    %c0_i32_0 = arith.constant 0 : i32
    %c0_i32_1 = arith.constant 0 : i32
    return %c0_i32, %c0_i32_0 : i32, i32
  }
  func.func @transform_5(%arg0: i32, %arg1: i32) -> (i32, i32, i32, i32) {
    %c0_i32 = arith.constant 0 : i32
    %c0_i32_0 = arith.constant 0 : i32
    %c0_i32_1 = arith.constant 0 : i32
    return %arg0, %arg1, %c0_i32, %c0_i32_0 : i32, i32, i32, i32
  }
}

</mosaic_0001>

<bundles_post_ra>
// kernel: tpu_custom_call.1
= control target key start
LH: loop header
LB: loop body
LE: loop exit
PB: predicated region body
PF: predicated region fallthrough
CT: control target
= control target key end

     0   :  { %s4922_s0 = inlined_call_operand.hbm [shape: bf16[2,8,2,8,128], index: 0, kind: input, shape index: {}]   ;;  %s4923_s1 = inlined_call_operand.hbm [shape: bf16[576,128], index: 1, kind: input, shape index: {}]   ;;  %s4924_s2 = inlined_call_operand.vmem [shape: f32[1,128], index: 2, kind: input, shape index: {}]   ;;  %s4925_s3 = inlined_call_operand.hbm [shape: bf16[1152,128], index: 3, kind: input, shape index: {}]   ;;  %s4926_s4 = inlined_call_operand.vmem [shape: f32[1,128], index: 4, kind: input, shape index: {}]   ;;  %s4927_s5 = inlined_call_operand.hbm [shape: bf16[2,8,8,128], index: 5, kind: output, shape index: {}]  }
   0x1   :  { %4942 = sst [smem:[#allocation19_spill]] %s4923_s1 }
   0x2   :  { %4943 = sst [smem:[#allocation20_spill]] %s4925_s3 }
   0x3   :  { %4944 = sst [smem:[#allocation21_spill]] %s4927_s5 }
   0x4   :  { %10 = vsyncpa [#allocation5], 0 }
   0x5   :  { %12 = vsyncpa [#allocation5 + $0x1], 0 }
   0x6   :  { %13 = vsyncpa [#allocation8], 0 }
   0x7   :  { %14 = vsyncpa [#allocation6], 0 }
   0x8   :  { %16 = vsyncpa [#allocation6 + $0x1], 0  ;;  %s4119_s18 = smov 0   ;;  %s4121_s19 = smov 0  }
   0x9   :  { %s4123_s20 = smov 0   ;;  %s4125_s21 = smov 0  }
   0xa   :  { %s4127_s22 = smov 0   ;;  %s4129_s23 = smov 0  }
   0xb   :  { %s4131_s24 = smov 0   ;;  %s4133_s25 = smov 0  }
   0xc   :  { %s4135_s26 = smov 0   ;;  %s4137_s27 = smov 0  }
   0xd   :  { %s4139_s28 = smov 0  }
   0xe LB: > { %4945 = sst [smem:[#allocation14_spill]] %s4032_s18  ;;  %s3033_s29 = sadd.s32 4294967295, %s4072_s28   ;;  %s4072_s28 = sphi %s4139_s28, %s22_s28   ;;  %s4068_s27 = sphi %s4137_s27, %s4994_s27   ;;  %s4064_s26 = sphi %s4135_s26, %s4986_s26   ;;  %s4060_s25 = sphi %s4133_s25, %s4993_s25   ;;  %s4056_s24 = sphi %s4131_s24, %s4985_s24   ;;  %s4052_s23 = sphi %s4129_s23, %s4992_s23   ;;  %s4048_s22 = sphi %s4127_s22, %s4991_s22   ;;  %s4044_s21 = sphi %s4125_s21, %s4990_s21   ;;  %s4040_s20 = sphi %s4123_s20, %s4989_s20   ;;  %s4036_s19 = sphi %s4121_s19, %s4988_s19   ;;  %s4032_s18 = sphi %s4119_s18, %s4987_s18  }
   0xf   : > { %4946 = sst [smem:[#allocation15_spill]] %s4064_s26  ;;  %s3034_s30 = sadd.s32 4294967294, %s4072_s28  }
  0x10   : > { %p54_p0 = scmp.ne.s32.totalorder %s4048_s22, %s4044_s21  ;;  %p4175_p1 = scmp.eq.s32.totalorder %s3033_s29, 0 }
  0x11   : > { %p163_p2 = scmp.ne.s32.totalorder %s4040_s20, %s4036_s19  ;;  %p164_p4 = scmp.eq.s32.totalorder %s3033_s29, 3 }
  0x12   : > { %s4947_s6 = scalar_select %p4175_p1, 1, 0 }
  0x13   : > { %p4184_p3 = por %p4175_p1, %p54_p0  ;;  %p169_p5 = scmp.ne.s32.totalorder %s4036_s19, %s4032_s18 }
  0x14   : > { %p170_p6 = scmp.eq.s32.totalorder %s3034_s30, 3  ;;  %p4190_p7 = por %p164_p4, %p163_p2 }
  0x15   : > { %s4948_s8 = scalar_select %p4184_p3, 1, 0 }
  0x16   : > { %s4949_s9 = scalar_select %p4190_p7, 1, 0 }
  0x17   : > { %p3035_p8 = scmp.ge.s32.totalorder %s4072_s28, 1  ;;  %p4195_p9 = por %p170_p6, %p169_p5 }
  0x18   : > { %4950 = sst [smem:[#allocation16_spill]] %s4949_s9  ;;  %p177_p10 = scmp.lt.s32.totalorder %s4072_s28, 5 }
  0x19   : > { %s4951_s10 = scalar_select %p4195_p9, 1, 0 }
  0x1a   : > { %p4200_p11 = pnand %p3035_p8, %p177_p10  ;;  %s4074_s12 = smov [#allocation7]  }
  0x1b   : > { %4952 = sst [smem:[#allocation17_spill]] %s4951_s10  ;;  %s189_s13 = sshll.u32 %s4074_s12, 4  ;;  %s190_s13 = int_to_ptr.vmem [resolvable:$true] %s189_s13 }
  0x1c   : > { %s4953_s11 = scalar_select %p4200_p11, 1, 0 }
  0x1d   : > { %p3558_p12 = pneg %p4200_p11  ;;  %s4075_s15 = smov [#allocation9]  }
  0x1e   : > { %s205_s16 = sshll.u32 %s4075_s15, 4  ;;  %s4955_s1 = sld [smem:[#allocation19_spill]]  ;;  %s4212_s16 = int_to_ptr.vmem [resolvable:$true] %s205_s16 }
  0x1f   : > { %p4208_p13 = pnand %p3558_p12, %p4175_p1 }
  0x21   : > { %p3862_p2 = pneg %p4208_p13 }
  0x24   : > { %s3860_s29 = scalar_lea.hbm %s4955_s1, 4608 }
  0x25   : > { %p3861_p0 = scmp.ne.s32.totalorder %s4955_s1, %s3860_s29  ;;  %p3867_p6 = scmp.lt.u32.totalorder %s3860_s29, %s4955_s1 }
  0x27   : > { %p3863_p4 = pnand %p3862_p2, %p3861_p0 }
  0x29   : > { %p3864_p5 = pneg %p3863_p4 }
  0x2b   : > { %p3869_p8 = pnand %p3867_p6, %p3864_p5 }
  0x2d   : > { %3872 = shalt.err (!%p3869_p8)
}
  0x2e   : > { %s3873_s15 = scalar_lea.vmem %s190_s13, 4608  ;;  %p3881_p7 = scmp.lt.s32.totalorder %s190_s13, %s190_s13 }
  0x2f   : > { %p3874_p10 = scmp.ne.s32.totalorder %s190_s13, %s3873_s15  ;;  %p3882_p1 = scmp.lt.s32.totalorder %s3873_s15, %s3873_s15 }
  0x31   : > { %p3876_p12 = pnand %p3874_p10, %p3862_p2  ;;  %p3883_p3 = por %p3882_p1, %p3881_p7 }
  0x33   : > { %p3877_p9 = pneg %p3876_p12 }
  0x35   : > { %p3884_p11 = pnand %p3883_p3, %p3877_p9 }
  0x37   : > { %3887 = shalt.err (!%p3884_p11)
}
  0x38   : > { %s4938_s17 = smov 64   ;;  %s4939_s21 = smov 4  }
  0x39   : > { %3561 = dma.hbm_to_vmem [thread:$0]  (!%p4208_p13), %s4955_s1, 4608, %s190_s13, [#allocation8], %s4938_s17, %s4938_s17, %s4939_s21  }
  0x3a   : > { %s4956_s3 = sld [smem:[#allocation20_spill]] }
  0x40   : > { %s3888_s12 = scalar_lea.hbm %s4956_s3, 9216 }
  0x41   : > { %p3889_p1 = scmp.ne.s32.totalorder %s4956_s3, %s3888_s12  ;;  %p3895_p9 = scmp.lt.u32.totalorder %s3888_s12, %s4956_s3 }
  0x43   : > { %p3891_p3 = pnand %p3889_p1, %p3862_p2 }
  0x45   : > { %p3892_p7 = pneg %p3891_p3 }
  0x47   : > { %p3897_p11 = pnand %p3895_p9, %p3892_p7 }
  0x49   : > { %3900 = shalt.err (!%p3897_p11)
}
  0x4a   : > { %s3901_s13 = scalar_lea.vmem %s4212_s16, 9216  ;;  %p3909_p6 = scmp.lt.s32.totalorder %s4212_s16, %s4212_s16 }
  0x4b   : > { %p3902_p0 = scmp.ne.s32.totalorder %s4212_s16, %s3901_s13  ;;  %p3910_p8 = scmp.lt.s32.totalorder %s3901_s13, %s3901_s13 }
  0x4d   : > { %p3904_p4 = pnand %p3902_p0, %p3862_p2  ;;  %p3911_p10 = por %p3910_p8, %p3909_p6 }
  0x4f   : > { %p3905_p5 = pneg %p3904_p4 }
  0x51   : > { %p3912_p12 = pnand %p3911_p10, %p3905_p5 }
  0x53   : > { %3915 = shalt.err (!%p3912_p12)
}
  0x54   : > { %3564 = dma.hbm_to_vmem [thread:$0]  (!%p4208_p13), %s4956_s3, 9216, %s4212_s16, [#allocation8], %s4938_s17, %s4938_s17, %s4939_s21  }
  0x55   : > { %s31_s9 = sadd.s32 1, %s4064_s26  ;;  %s34_s14 = sadd.s32 1, %s4068_s27 }
  0x56   : > { %p32_p2 = scmp.ge.s32.totalorder %s31_s9, 2  ;;  %s41_s7 = sadd.s32 1, %s4052_s23 }
  0x57   : > { %p48_p1 = scmp.ne.s32.totalorder %s4052_s23, %s4048_s22  ;;  %p49_p3 = scmp.eq.s32.totalorder %s4072_s28, 0 }
  0x58   : > { %s4996_s9 = smov (%p32_p2, %s31_s9), 0  ;;  %s4998_s14 = smov (!%p32_p2, %s34_s14), %s4068_s27 }
  0x59   : > { %4957 = sst [smem:[#allocation18_spill]] %s4996_s9  ;;  %p4276_p7 = por %p49_p3, %p48_p1 }
  0x5a   : > { %s149_s29 = ssub.s32 %s4064_s26, %s4996_s9  ;;  %p36_p13 = scmp.ge.s32.totalorder %s4998_s14, 2 }
  0x5b   : > { %p3575_p9 = scmp.lt.s32.totalorder %s4072_s28, 4  ;;  %s222_s16 = sand.u32 1, %s4052_s23  }
  0x5c   : > { %s3287_s30 = sshll.u32 %s4068_s27, 10  ;;  %s5000_s14 = smov (%p36_p13, %s4998_s14), 0 }
  0x5d   : > { %s3039_s12 = sshll.u32 %s222_s16, 6  ;;  %s38_s15 = ssub.s32 %s4068_s27, %s5000_s14 }
  0x5e   : > { %p39_p11 = scmp.eq.s32.totalorder %s38_s15, 0  ;;  %s150_s13 = sor.u32 %s149_s29, %s38_s15 }
  0x5f   : > { %p151_p0 = scmp.eq.s32.totalorder %s150_s13, 0  ;;  %s4292_s17 = scalar_lea.hbm %s4922_s0, %s3287_s30 }
  0x60   : > { %s4295_s21 = scalar_select %p39_p11, %s4052_s23, %s41_s7  }
  0x61   : > { %s4959_s1 = sadd.s32 1, %s4040_s20  ;;  %s226_s9 = scalar_lea.vmem [#allocation4], %s3039_s12 }
  0x62   : > { %s4300_s3 = scalar_select %p151_p0, %s4040_s20, %s4959_s1  }
  0x63   : > { %s233_s26 = sshll.u32 %s226_s9, 4  ;;  %p4306_p4 = pnand %p3575_p9, %p4276_p7  ;;  %s4310_s26 = int_to_ptr.vmem [resolvable:$true] %s233_s26 }
  0x64   : > { %s4312_s30 = scalar_lea.sflag [#allocation5], %s222_s16  ;;  %s3916_s7 = scalar_lea.hbm %s4292_s17, 1024 }
  0x65   : > { %p3917_p5 = scmp.ne.s32.totalorder %s4292_s17, %s3916_s7  ;;  %p3918_p6 = pneg %p4306_p4 }
  0x66   : > { %s3921_s10 = scalar_lea.hbm %s4922_s0, 2048  ;;  %p3922_p12 = scmp.lt.u32.totalorder %s4292_s17, %s4922_s0 }
  0x67   : > { %p3919_p8 = pnand %p3918_p6, %p3917_p5  ;;  %p3923_p2 = scmp.lt.u32.totalorder %s3921_s10, %s3916_s7 }
  0x68   : > { %p3925_p3 = scmp.lt.u32.totalorder %s3916_s7, %s4292_s17 }
  0x69   : > { %p3920_p10 = pneg %p3919_p8  ;;  %p3924_p1 = por %p3923_p2, %p3922_p12 }
  0x6b   : > { %p3926_p7 = por %p3925_p3, %p3924_p1 }
  0x6d   : > { %p3927_p13 = pnand %p3926_p7, %p3920_p10 }
  0x6f   : > { %3930 = shalt.err (!%p3927_p13)
}
  0x70   : > { %s3931_s16 = scalar_lea.vmem %s4310_s26, 1024  ;;  %s4078_s13 = smov [#allocation4]  }
  0x71   : > { %p3932_p9 = scmp.ne.s32.totalorder %s4310_s26, %s3931_s16  ;;  %s3936_s5 = sshll.u32 %s4078_s13, 4  ;;  %s3937_s5 = int_to_ptr.vmem [resolvable:$false] %s3936_s5 }
  0x72   : > { %s3938_s18 = scalar_lea.vmem %s3937_s5, 2048  ;;  %p3939_p5 = scmp.lt.s32.totalorder %s4310_s26, %s3937_s5 }
  0x73   : > { %p3934_p11 = pnand %p3932_p9, %p3918_p6  ;;  %p3940_p8 = scmp.lt.s32.totalorder %s3938_s18, %s3931_s16 }
  0x75   : > { %p3935_p0 = pneg %p3934_p11  ;;  %p3941_p12 = por %p3940_p8, %p3939_p5 }
  0x77   : > { %p3942_p2 = pnand %p3941_p12, %p3935_p0 }
  0x79   : > { %3945 = shalt.err (!%p3942_p2)
}
  0x7a   : > { %s4961_s7 = smov 4   ;;  %s4962_s1 = smov 64  }
  0x7b   : > { %3568 = dma.hbm_to_vmem [thread:$0]  (!%p4306_p4), %s4292_s17, 1024, %s4310_s26, %s4312_s30, %s4962_s1, %s4962_s1, %s4961_s7  }
  0x7c   : > { %p4963_p6 = scmp.ne.s32.totalorder %s4953_s11, 0 }
  0x7d   : > { %s247_s9 = sand.u32 (!%p4963_p6), 1, %s4048_s22   ;;  %p4964_p10 = scmp.ne.s32.totalorder (!%p4963_p6), %s4948_s8, 0 }
  0x7e   : > { %245 = sbr.rel (%p4963_p6) target bundleno = 1182 (0x49e), region = 40  ;;  %s4346_s10 = sshll.u32 (!%p4963_p6), %s247_s9, 6 }
  0x7f   : > { %s248_s12 = scalar_lea.sflag (!%p4963_p6), [#allocation5], %s247_s9  ;;  %s251_s15 = scalar_lea.vmem (!%p4963_p6), [#allocation4], %s4346_s10 }
  0x85   : > { %4019 = dma.done.wait (%p4964_p10), %s248_s12, 1024  }
  0x86   : > { %4021 = vsyncadd (%p4964_p10), %s248_s12, 4294966272  ;;  %p4965_p1 = scmp.ne.s32.totalorder %s4947_s6, 0 }
  0x88   : > { %4023 = dma.done.wait (%p4965_p1), [#allocation8], 13824  }
  0x89   : > { %4025 = vsyncadd (%p4965_p1), [#allocation8], 4294953472  ;;  %vm289_vm0 = vcmask 519168   ;;  %s3289_s26 = sshll.u32 %s4056_s24, 5  ;;  %vm291_vm1 = vcmask 516096   ;;  %v4079_v0 = vmov 0  }
  0x8a   : > { %290 = vst.msk [vmem:[#allocation2] sm:$0xf] %vm289_vm0, %v4079_v0  ;;  %293 = vst.msk [vmem:[#allocation2 + $0x8] sm:$0xf] %vm289_vm0, %v4079_v0  ;;  %vm301_vm2 = vsmask.f32 256  ;;  %s4368_s6 = scalar_lea.vmem %s251_s15, %s3289_s26 [#allocation4] }
  0x8b   : > { %296 = vst.msk [vmem:[#allocation2 + $0x30] sm:$0xf] %vm289_vm0, %v4079_v0  ;;  %298 = vst.msk [vmem:[#allocation2 + $0x38] sm:$0xf] %vm289_vm0, %v4079_v0  ;;  %vm327_vm3 = vsmask.f32 7938 }
  0x8c   : > { %292 = vst.msk [vmem:[#allocation2 + $0x4] sm:$0x1] %vm291_vm1, %v4079_v0  ;;  %294 = vst.msk [vmem:[#allocation2 + $0xc] sm:$0x1] %vm291_vm1, %v4079_v0  ;;  %v360_v3 = vld [vmem:[%s4368_s6 + $0x10] sm:$0xf] }
  0x8d   : > { %297 = vst.msk [vmem:[#allocation2 + $0x34] sm:$0x1] %vm291_vm1, %v4079_v0  ;;  %299 = vst.msk [vmem:[#allocation2 + $0x3c] sm:$0x1] %vm291_vm1, %v4079_v0  ;;  %v361_v4 = vld [vmem:[%s4368_s6 + $0x14] sm:$0xf] }
  0x8e   : > { %vm4372_vm4 = vmand %vm289_vm0, %vm327_vm3  ;;  %v356_v5 = vld [vmem:[%s4368_s6] sm:$0xf]  ;;  %v4385_v6 = vmax.bf16 %v361_v4, %v360_v3  ;;  %v357_v7 = vld [vmem:[%s4368_s6 + $0x4] sm:$0xf]  ;;  %s4080_s8 = smov 64   ;;  %s283_s11 = sand.u32 1, %s4036_s19  }
  0x8f   : > { %vm4378_vm5 = vmand %vm291_vm1, %vm301_vm2  ;;  %v362_v8 = vld [vmem:[%s4368_s6 + $0x18] sm:$0xf]  ;;  %v363_v9 = vld [vmem:[%s4368_s6 + $0x1c] sm:$0xf]  ;;  %v4390_v10 = vmax.bf16 %v357_v7, %v356_v5  ;;  %s4445_s17 = sshll.u32 %s283_s11, 4  ;;  %s3047_s29 = sshll.u32 %s4056_s24, 2 }
  0x90   : > { %v358_v11 = vld [vmem:[%s4368_s6 + $0x8] sm:$0xf]  ;;  %v359_v12 = vld [vmem:[%s4368_s6 + $0xc] sm:$0xf]  ;;  %376 = vrot.lane.b32.xlu1 %v4385_v6, %s4080_s8  ;;  %v4396_v14 = vmax.bf16 %v363_v9, %v362_v8  ;;  %v315_v17 = vld [vmem:[#allocation2 + $0x20] sm:$0x1] }
  0x91   : > { %v303_v13 = vld [vmem:[#allocation2] sm:$0x1]  ;;  %v306_v16 = vld [vmem:[#allocation2 + $0x8] sm:$0x1]  ;;  %372 = vrot.lane.b32.xlu0 %v4390_v10, %s4080_s8  ;;  %v4403_v18 = vmax.bf16 %v359_v12, %v358_v11  ;;  %vm4407_vm6 = vmand %vm291_vm1, %vm327_vm3  ;;  %v316_v21 = vsel %vm4378_vm5, 0, %v315_v17  ;;  %s4471_s30 = scalar_lea.vmem [#allocation10], %s4445_s17 }
  0x92   : > { %v304_v15 = vsel %vm4378_vm5, 0, %v303_v13  ;;  %v307_v20 = vsel %vm4378_vm5, 0, %v306_v16  ;;  %v321_v22 = vld [vmem:[#allocation2 + $0x30] sm:$0x1]  ;;  %v324_v23 = vld [vmem:[#allocation2 + $0x38] sm:$0x1] }
  0x93   : > { %305 = vst [vmem:[#allocation2] sm:$0x1] %v304_v15  ;;  %308 = vst [vmem:[#allocation2 + $0x8] sm:$0x1] %v307_v20  ;;  %v322_v24 = vsel %vm4378_vm5, 0, %v321_v22  ;;  %v325_v25 = vsel %vm4378_vm5, 0, %v324_v23 }
  0x94   : > { %317 = vst [vmem:[#allocation2 + $0x20] sm:$0x1] %v316_v21  ;;  %v329_v26 = vld [vmem:[#allocation2 + $0x4] sm:$0x1]  ;;  %v332_v27 = vld [vmem:[#allocation2 + $0xc] sm:$0x1]  ;;  %378 = vrot.lane.b32.xlu1 %v4396_v14, %s4080_s8 }
  0x95   : > { %323 = vst [vmem:[#allocation2 + $0x30] sm:$0x1] %v322_v24  ;;  %326 = vst [vmem:[#allocation2 + $0x38] sm:$0x1] %v325_v25  ;;  %v330_v28 = vsel %vm4407_vm6, 0, %v329_v26  ;;  %v333_v29 = vsel %vm4407_vm6, 0, %v332_v27  ;;  %374 = vrot.lane.b32.xlu0 %v4403_v18, %s4080_s8 }
  0x96   : > { %v341_v30 = vld [vmem:[#allocation2 + $0x24] sm:$0x1]  ;;  %v347_v31 = vld [vmem:[#allocation2 + $0x34] sm:$0x1]  ;;  %331 = vst [vmem:[#allocation2 + $0x4] sm:$0x1] %v330_v28 }
  0x97   : > { %334 = vst [vmem:[#allocation2 + $0xc] sm:$0x1] %v333_v29  ;;  %v342_v32 = vsel %vm4407_vm6, 0, %v341_v30  ;;  %v348_v33 = vsel %vm4407_vm6, 0, %v347_v31  ;;  %v350_v34 = vld [vmem:[#allocation2 + $0x3c] sm:$0x1] }
  0x98   : > { %v309_v35 = vld [vmem:[#allocation2 + $0x10] sm:$0x1]  ;;  %343 = vst [vmem:[#allocation2 + $0x24] sm:$0x1] %v342_v32  ;;  %349 = vst [vmem:[#allocation2 + $0x34] sm:$0x1] %v348_v33 }
  0x99   : > { %v351_v36 = vsel %vm4407_vm6, 0, %v350_v34  ;;  %v310_v37 = vsel %vm4378_vm5, 0, %v309_v35  ;;  %v335_v38 = vld [vmem:[#allocation2 + $0x14] sm:$0x1]  ;;  %v318_v39 = vld [vmem:[#allocation2 + $0x28] sm:$0x1] }
  0x9a   : > { %352 = vst [vmem:[#allocation2 + $0x3c] sm:$0x1] %v351_v36  ;;  %311 = vst [vmem:[#allocation2 + $0x10] sm:$0x1] %v310_v37  ;;  %v336_v40 = vsel %vm4407_vm6, 0, %v335_v38  ;;  %v319_v41 = vsel %vm4378_vm5, 0, %v318_v39 }
  0x9b   : > { %v344_v42 = vld [vmem:[#allocation2 + $0x2c] sm:$0x1]  ;;  %v312_v43 = vld [vmem:[#allocation2 + $0x18] sm:$0x1]  ;;  %337 = vst [vmem:[#allocation2 + $0x14] sm:$0x1] %v336_v40 }
  0x9c   : > { %320 = vst [vmem:[#allocation2 + $0x28] sm:$0x1] %v319_v41  ;;  %v345_v44 = vsel %vm4407_vm6, 0, %v344_v42  ;;  %v313_v45 = vsel %vm4378_vm5, 0, %v312_v43  ;;  %v338_v46 = vld [vmem:[#allocation2 + $0x1c] sm:$0x1] }
  0x9d   : > { %346 = vst [vmem:[#allocation2 + $0x2c] sm:$0x1] %v345_v44  ;;  %314 = vst [vmem:[#allocation2 + $0x18] sm:$0x1] %v313_v45  ;;  %v339_v47 = vsel %vm4407_vm6, 0, %v338_v46  ;;  %p3050_p4 = scmp.le.s32.totalorder %s4056_s24, 0 }
  0x9e   : > { %340 = vst [vmem:[#allocation2 + $0x1c] sm:$0x1] %v339_v47  ;;  %v443_v59 = vld [vmem:[#allocation2 + $0x20] sm:$0xf]  ;;  %s3051_s16 = sadd.s32 (!%p3050_p4), 4294967294, %s3047_s29  ;;  %s4081_s18 = smov (!%p3050_p4), 64  }
  0x9f   : > { %v446_v60 = vld [vmem:[#allocation2 + $0x24] sm:$0x1]  ;;  %s3290_s13 = sshll.u32 (!%p3050_p4), %s3051_s16, 3  ;;  %v499_v43 = vld [vmem:[#allocation2] sm:$0xf] (!%p3050_p4) }
  0xa0   : > { %s462_s5 = scalar_lea.vmem (!%p3050_p4), %s251_s15, %s3290_s13 [#allocation4]  ;;  %v502_v44 = vld [vmem:[#allocation2 + $0x4] sm:$0x1] (!%p3050_p4) }
  0xa1   : > { %v431_v4 = vld [vmem:[#allocation2 + $0x10] sm:$0xf]  ;;  %v463_v30 = vld [vmem:[%s462_s5] sm:$0xf] (!%p3050_p4)  ;;  %v464_v31 = vld [vmem:[%s462_s5 + $0x4] sm:$0xf] (!%p3050_p4) }
  0xa2   : > { %v434_v5 = vld [vmem:[#allocation2 + $0x14] sm:$0x1]  ;;  %v465_v32 = vld [vmem:[%s462_s5 + $0x8] sm:$0xf] (!%p3050_p4)  ;;  %v467_v33 = vmax.bf16 (!%p3050_p4), %v464_v31, %v463_v30  ;;  %v466_v34 = vld [vmem:[%s462_s5 + $0xc] sm:$0xf] (!%p3050_p4) }
  0xa3   : > { %v449_v16 = vld [vmem:[#allocation2 + $0x28] sm:$0xf]  ;;  %v468_v35 = vmax.bf16 (!%p3050_p4), %v466_v34, %v465_v32 }
  0xa4   : > { %v452_v17 = vld [vmem:[#allocation2 + $0x2c] sm:$0x1]  ;;  %v437_v22 = vld [vmem:[#allocation2 + $0x18] sm:$0xf]  ;;  %471 = vrot.lane.b32.xlu0 (!%p3050_p4), %v467_v33, %s4081_s18 }
  0xa5   : > { %v440_v23 = vld [vmem:[#allocation2 + $0x1c] sm:$0x1] }
  0xa8   : > { %473 = vrot.lane.b32.xlu0 (!%p3050_p4), %v468_v35, %s4081_s18 }
 0x102   : > { %v377_v48 = vpop.permute.xlu1 %376 }
 0x103   : > { %v386_v49 = vmax.bf16 %v377_v48, %v4385_v6  ;;  %v373_v50 = vpop.permute.xlu0 %372 }
 0x104   : > { %v384_v51 = vmax.bf16 %v373_v50, %v4390_v10 }
 0x105   : > { %v405_v52 = vshrl.u32 %v386_v49, 16  ;;  %v408_v56 = vshll.u32 %v386_v49, 16 }
 0x106   : > { %v389_v53 = vshrl.u32 %v384_v51, 16  ;;  %v379_v54 = vpop.permute.xlu1 %378  ;;  %v392_v62 = vshll.u32 %v384_v51, 16 }
 0x107   : > { %v407_v55 = vrot.slane %v405_v52, 7  ;;  %v387_v57 = vmax.bf16 %v379_v54, %v4396_v14  ;;  %v375_v58 = vpop.permute.xlu0 %374  ;;  %v505_v52 = vld [vmem:[#allocation2 + $0x8] sm:$0xf] (!%p3050_p4) }
 0x108   : > { %v391_v61 = vrot.slane %v389_v53, 7  ;;  %v385_v63 = vmax.bf16 %v375_v58, %v4403_v18  ;;  %v508_v53 = vld [vmem:[#allocation2 + $0xc] sm:$0x1] (!%p3050_p4) }
 0x109   : > { %v410_v0 = vor.u32 %v408_v56, %v407_v55  ;;  %v411_v3 = vrot.slane %v407_v55, 4  ;;  %v413_v6 = vshrl.u32 %v387_v57, 16  ;;  %v416_v13 = vshll.u32 %v387_v57, 16 }
 0x10a   : > { %v394_v7 = vor.u32 %v392_v62, %v391_v61  ;;  %v395_v8 = vrot.slane %v391_v61, 4  ;;  %v397_v9 = vshrl.u32 %v385_v63, 16  ;;  %v400_v19 = vshll.u32 %v385_v63, 16 }
 0x10b   : > { %v444_v10 = vsel %vm4372_vm4, %v410_v0, %v443_v59  ;;  %v447_v11 = vsel %vm4378_vm5, %v411_v3, %v446_v60  ;;  %v415_v12 = vrot.slane %v413_v6, 7  ;;  %458 = sbr.rel (%p3050_p4) target bundleno = 293 (0x125), region = 56 }
 0x10c   : > { %445 = vst [vmem:[#allocation2 + $0x20] sm:$0xf] %v444_v10  ;;  %448 = vst [vmem:[#allocation2 + $0x24] sm:$0x1] %v447_v11  ;;  %v432_v14 = vsel %vm4372_vm4, %v394_v7, %v431_v4  ;;  %v435_v15 = vsel %vm4378_vm5, %v395_v8, %v434_v5  ;;  %v399_v18 = vrot.slane %v397_v9, 7 }
 0x10d   : > { %433 = vst [vmem:[#allocation2 + $0x10] sm:$0xf] %v432_v14  ;;  %436 = vst [vmem:[#allocation2 + $0x14] sm:$0x1] %v435_v15  ;;  %v418_v20 = vor.u32 %v416_v13, %v415_v12  ;;  %v419_v21 = vrot.slane %v415_v12, 4 }
 0x10e   : > { %v402_v24 = vor.u32 %v400_v19, %v399_v18  ;;  %v403_v25 = vrot.slane %v399_v18, 4 }
 0x10f   : > { %v450_v26 = vsel %vm4372_vm4, %v418_v20, %v449_v16  ;;  %v453_v27 = vsel %vm4378_vm5, %v419_v21, %v452_v17 }
 0x110   : > { %451 = vst [vmem:[#allocation2 + $0x28] sm:$0xf] %v450_v26  ;;  %454 = vst [vmem:[#allocation2 + $0x2c] sm:$0x1] %v453_v27  ;;  %v438_v28 = vsel %vm4372_vm4, %v402_v24, %v437_v22  ;;  %v441_v29 = vsel %vm4378_vm5, %v403_v25, %v440_v23 }
 0x111   : > { %439 = vst [vmem:[#allocation2 + $0x18] sm:$0xf] %v438_v28  ;;  %442 = vst [vmem:[#allocation2 + $0x1c] sm:$0x1] %v441_v29 }
 0x116   : > { %v472_v36 = vpop.permute.xlu0 %471 }
 0x117   : > { %v477_v37 = vmax.bf16 %v472_v36, %v467_v33 }
 0x119   : > { %v480_v38 = vshrl.u32 %v477_v37, 16  ;;  %v483_v41 = vshll.u32 %v477_v37, 16 }
 0x11a   : > { %v474_v39 = vpop.permute.xlu0 %473 }
 0x11b   : > { %v482_v40 = vrot.slane %v480_v38, 7  ;;  %v478_v42 = vmax.bf16 %v474_v39, %v468_v35 }
 0x11d   : > { %v485_v45 = vor.u32 %v483_v41, %v482_v40  ;;  %v486_v46 = vrot.slane %v482_v40, 4  ;;  %v488_v47 = vshrl.u32 %v478_v42, 16  ;;  %v491_v51 = vshll.u32 %v478_v42, 16 }
 0x11f   : > { %v500_v48 = vsel %vm4372_vm4, %v485_v45, %v499_v43  ;;  %v503_v49 = vsel %vm4378_vm5, %v486_v46, %v502_v44  ;;  %v490_v50 = vrot.slane %v488_v47, 7 }
 0x120   : > { %501 = vst [vmem:[#allocation2] sm:$0xf] %v500_v48  ;;  %504 = vst [vmem:[#allocation2 + $0x4] sm:$0x1] %v503_v49 }
 0x121   : > { %v493_v54 = vor.u32 %v491_v51, %v490_v50  ;;  %v494_v55 = vrot.slane %v490_v50, 4 }
 0x123   : > { %v506_v56 = vsel %vm4372_vm4, %v493_v54, %v505_v52  ;;  %v509_v57 = vsel %vm4378_vm5, %v494_v55, %v508_v53 }
 0x124   : > { %507 = vst [vmem:[#allocation2 + $0x8] sm:$0xf] %v506_v56  ;;  %510 = vst [vmem:[#allocation2 + $0xc] sm:$0x1] %v509_v57 }
 0x125 PF: > { %p3054_p3 = scmp.ge.s32.totalorder %s4056_s24, 1 }
 0x126   : > { %v3057_v58 = vld [vmem:[%s4368_s6 + $0x20] sm:$0xf] (!%p3054_p3)  ;;  %v3058_v59 = vld [vmem:[%s4368_s6 + $0x24] sm:$0xf] (!%p3054_p3)  ;;  %v3059_v61 = vld [vmem:[%s4368_s6 + $0x28] sm:$0xf] (!%p3054_p3) }
 0x127   : > { %514 = sbr.rel (%p3054_p3) target bundleno = 426 (0x1aa), region = 60  ;;  %v523_v60 = vmax.bf16 (!%p3054_p3), %v3058_v59, %v3057_v58  ;;  %v3060_v62 = vld [vmem:[%s4368_s6 + $0x2c] sm:$0xf] (!%p3054_p3)  ;;  %s4082_s7 = smov (!%p3054_p3), 64   ;;  %v555_v9 = vld [vmem:[#allocation2 + $0x30] sm:$0xf] (!%p3054_p3) }
 0x128   : > { %v524_v63 = vmax.bf16 (!%p3054_p3), %v3060_v62, %v3059_v61  ;;  %v558_v10 = vld [vmem:[#allocation2 + $0x34] sm:$0x1] (!%p3054_p3)  ;;  %v561_v18 = vld [vmem:[#allocation2 + $0x38] sm:$0xf] (!%p3054_p3)  ;;  %v564_v19 = vld [vmem:[#allocation2 + $0x3c] sm:$0x1] (!%p3054_p3) }
 0x129   : > { %527 = vrot.lane.b32.xlu0 (!%p3054_p3), %v523_v60, %s4082_s7 }
 0x12d   : > { %529 = vrot.lane.b32.xlu0 (!%p3054_p3), %v524_v63, %s4082_s7 }
 0x19b   : > { %v528_v0 = vpop.permute.xlu0 %527 }
 0x19c   : > { %v533_v3 = vmax.bf16 %v528_v0, %v523_v60 }
 0x19e   : > { %v536_v4 = vshrl.u32 %v533_v3, 16  ;;  %v539_v7 = vshll.u32 %v533_v3, 16 }
 0x19f   : > { %v530_v5 = vpop.permute.xlu0 %529 }
 0x1a0   : > { %v538_v6 = vrot.slane %v536_v4, 7  ;;  %v534_v8 = vmax.bf16 %v530_v5, %v524_v63 }
 0x1a2   : > { %v541_v11 = vor.u32 %v539_v7, %v538_v6  ;;  %v542_v12 = vrot.slane %v538_v6, 4  ;;  %v544_v13 = vshrl.u32 %v534_v8, 16  ;;  %v547_v17 = vshll.u32 %v534_v8, 16 }
 0x1a4   : > { %v556_v14 = vsel %vm4372_vm4, %v541_v11, %v555_v9  ;;  %v559_v15 = vsel %vm4378_vm5, %v542_v12, %v558_v10  ;;  %v546_v16 = vrot.slane %v544_v13, 7 }
 0x1a5   : > { %557 = vst [vmem:[#allocation2 + $0x30] sm:$0xf] %v556_v14  ;;  %560 = vst [vmem:[#allocation2 + $0x34] sm:$0x1] %v559_v15 }
 0x1a6   : > { %v549_v20 = vor.u32 %v547_v17, %v546_v16  ;;  %v550_v21 = vrot.slane %v546_v16, 4 }
 0x1a8   : > { %v562_v22 = vsel %vm4372_vm4, %v549_v20, %v561_v18  ;;  %v565_v23 = vsel %vm4378_vm5, %v550_v21, %v564_v19 }
 0x1a9   : > { %563 = vst [vmem:[#allocation2 + $0x38] sm:$0xf] %v562_v22  ;;  %566 = vst [vmem:[#allocation2 + $0x3c] sm:$0x1] %v565_v23 }
 0x1aa PF: > { %v586_v24 = vld [vmem:[#allocation2 + $0x8] sm:$0xf]  ;;  %v4499_v25 = vld [vmem:[#allocation2 + $0xc] sm:$0x1]  ;;  %v589_v26 = vld [vmem:[#allocation2 + $0x20] sm:$0xf] }
 0x1ab   : > { %v3073_v27 = vcombine.low %v586_v24, %v586_v24  ;;  %v4502_v28 = vcombine.low %v586_v24, %v4499_v25  ;;  %v4504_v29 = vld [vmem:[#allocation2 + $0x24] sm:$0x1]  ;;  %v3076_v30 = vcombine.low %v589_v26, %v589_v26  ;;  %v4506_v31 = vld [vmem:[#allocation2 + $0x10] sm:$0xf]  ;;  %v4508_v1 = vld [vmem:[#allocation2] sm:$0xf] }
 0x1ac   : > { %v4511_v2 = vcombine.low %v589_v26, %v4504_v29  ;;  %v4513_v32 = vld [vmem:[#allocation2 + $0x4] sm:$0x1]  ;;  %v4515_v33 = vld [vmem:[#allocation2 + $0x8] sm:$0xf]  ;;  %v3074_v34 = vcombine.low %v4506_v31, %v4506_v31  ;;  %v4523_v36 = vld [vmem:[#allocation2 + $0x18] sm:$0xf] }
 0x1ad   : > { %748 = vrot.lane.b32.xlu0 %v3073_v27, %s4080_s8  ;;  %754 = vrot.lane.b32.xlu1 %v3076_v30, %s4080_s8  ;;  %v3061_v35 = vcombine.low %v4508_v1, %v4513_v32  ;;  %v4525_v37 = vld [vmem:[#allocation2 + $0xc] sm:$0x1]  ;;  %v4527_v38 = vld [vmem:[#allocation2 + $0x10] sm:$0xf]  ;;  %v4531_v40 = vld [vmem:[#allocation2 + $0x14] sm:$0x1]  ;;  %v3075_v47 = vcombine.low %v4523_v36, %v4523_v36 }
 0x1ae   : > { %v3062_v39 = vcombine.low %v4515_v33, %v4525_v37  ;;  %v4533_v41 = vld [vmem:[#allocation2 + $0x18] sm:$0xf]  ;;  %v3063_v44 = vcombine.low %v4527_v38, %v4531_v40  ;;  %v4537_v45 = vld [vmem:[#allocation2 + $0x1c] sm:$0x1]  ;;  %v3716_v46 = vld [vmem:[#allocation7 + $0x40] sm:$0xff]   ;;  %vm964_vm7 = vcmask 523264  }
 0x1af   : > { %v653_v42 = vshrl.u32 %v3061_v35, 16  ;;  %v655_v43 = vshll.u32 %v3061_v35, 16  ;;  %v3064_v49 = vcombine.low %v4533_v41, %v4537_v45  ;;  %v3717_v50 = vld [vmem:[#allocation7] sm:$0xff]   ;;  %3309 = vmatprep.subr.bf16.mxu0 %v3716_v46  ;;  %v3718_v55 = vld [vmem:[#allocation7 + $0x48] sm:$0xff]   ;;  %v4544_v58 = vld [vmem:[#allocation2 + $0x20] sm:$0xf] }
 0x1b0   : > { %v662_v48 = vshll.u32 %v3062_v39, 16  ;;  %v660_v52 = vshrl.u32 %v3062_v39, 16  ;;  %v667_v53 = vshrl.u32 %v3063_v44, 16  ;;  %v669_v54 = vshll.u32 %v3063_v44, 16  ;;  %3310 = vmatpush3.bf16.msra.mxu0 %v3717_v50  ;;  %v3719_v59 = vld [vmem:[#allocation7 + $0x8] sm:$0xff]   ;;  %v3720_v0 = vld [vmem:[#allocation7 + $0x50] sm:$0xff]  }
 0x1b1   : > { %750 = vrot.lane.b32.xlu0 %v3074_v34, %s4080_s8  ;;  %v657_v51 = vrot.slane %v655_v43, 1  ;;  %v676_v57 = vshll.u32 %v3064_v49, 16  ;;  %v4546_v62 = vld [vmem:[#allocation2 + $0x24] sm:$0x1]  ;;  %v4548_v63 = vld [vmem:[#allocation2 + $0x28] sm:$0xf]  ;;  %3311 = vmatprep.subr.bf16.mxu0 %v3718_v55 }
 0x1b2   : > { %v664_v56 = vrot.slane %v662_v48, 1  ;;  %v671_v61 = vrot.slane %v669_v54, 1  ;;  %v674_v3 = vshrl.u32 %v3064_v49, 16  ;;  %v4550_v5 = vld [vmem:[#allocation2 + $0x28] sm:$0xf]  ;;  %v3065_v6 = vcombine.low %v4544_v58, %v4546_v62  ;;  %v3721_v19 = vld [vmem:[#allocation7 + $0x10] sm:$0xff]  }
 0x1b3   : > { %v658_v60 = vor.u32 %v657_v51, %v653_v42  ;;  %v678_v4 = vrot.slane %v676_v57, 1  ;;  %v4554_v7 = vld [vmem:[#allocation2 + $0x2c] sm:$0x1]  ;;  %v4556_v8 = vld [vmem:[#allocation2 + $0x10] sm:$0xf]  ;;  %v3077_v35 = vcombine.low %v4550_v5, %v4550_v5  ;;  %vm4084_vm8 = vmmov 0  }
 0x1b4   : > { %v665_v9 = vor.u32 %v664_v56, %v660_v52  ;;  %v672_v10 = vor.u32 %v671_v61, %v667_v53  ;;  %v4562_v11 = vcombine.low %v4548_v63, %v4554_v7  ;;  %v610_v12 = vld [vmem:[#allocation2 + $0x14] sm:$0x1]  ;;  %v616_v13 = vld [vmem:[#allocation2 + $0x10] sm:$0xe]  ;;  %v4564_v14 = vld [vmem:[#allocation2 + $0x18] sm:$0xf]  ;;  %3312 = vmatpush3.bf16.msra.mxu0 %v3719_v59 }
 0x1b5   : > { %694 = vrot.lane.b32.xlu1 %v658_v60, %s4080_s8  ;;  %752 = vrot.lane.b32.xlu0 %v3075_v47, %s4080_s8  ;;  %v683_v15 = vshll.u32 %v3065_v6, 16  ;;  %v4567_v16 = vcombine.low %v4556_v8, %v610_v12  ;;  %v611_v17 = vld [vmem:[#allocation2 + $0x1c] sm:$0x1]  ;;  %v617_v18 = vld [vmem:[#allocation2 + $0x18] sm:$0xe]  ;;  %v3097_v21 = vcombine.low %v616_v13, %v610_v12  ;;  %v681_v23 = vshrl.u32 %v3065_v6, 16 }
 0x1b6   : > { %v690_v20 = vshll.u32 %v4562_v11, 16  ;;  %3313 = vmatprep.subr.bf16.mxu0 %v3720_v0  ;;  %v4570_v22 = vld [vmem:[#allocation2 + $0x30] sm:$0xf]  ;;  %v4574_v26 = vcombine.low %v4564_v14, %v611_v17  ;;  %v3098_v27 = vcombine.low %v617_v18, %v611_v17  ;;  %v3722_v30 = vld [vmem:[#allocation7 + $0x58] sm:$0xff]   ;;  %v679_v34 = vor.u32 %v678_v4, %v674_v3  ;;  %v4582_v44 = vld [vmem:[#allocation2 + $0x20] sm:$0xf] }
 0x1b7   : > { %v889_v24 = vshll.u32 %v4567_v16, 16  ;;  %v685_v39 = vrot.slane %v683_v15, 1  ;;  %v4580_v42 = vrot.slane %v3097_v21, 1  ;;  %v598_v43 = vld [vmem:[#allocation2 + $0x8] sm:$0xe]  ;;  %v688_v49 = vshrl.u32 %v4562_v11, 16 }
 0x1b8   : > { %v4584_v46 = vrot.slane %v3098_v27, 1  ;;  %v593_v47 = vld [vmem:[#allocation2 + $0x14] sm:$0x1]  ;;  %v612_v48 = vld [vmem:[#allocation2 + $0x24] sm:$0x1]  ;;  %3314 = vmatpush3.bf16.msra.mxu0 %v3721_v19  ;;  %v692_v50 = vrot.slane %v690_v20, 1  ;;  %v3085_v0 = vcombine.low %v598_v43, %v4499_v25 }
 0x1b9   : > { %696 = vrot.lane.b32.xlu1 %v665_v9, %s4080_s8  ;;  %698 = vrot.lane.b32.xlu0 %v672_v10, %s4080_s8  ;;  %v887_v51 = vshrl.u32 %v4567_v16, 16  ;;  %v599_v52 = vld [vmem:[#allocation2 + $0x10] sm:$0xe]  ;;  %v4589_v53 = vcombine.low %v4506_v31, %v593_v47  ;;  %v3723_v54 = vld [vmem:[#allocation7 + $0x18] sm:$0xff]   ;;  %v891_v55 = vrot.slane %v889_v24, 1  ;;  %v896_v56 = vshll.u32 %v4574_v26, 16 }
 0x1ba   : > { %3315 = vmatprep.subr.bf16.mxu0 %v3722_v30  ;;  %v3108_v57 = vcombine.low %v4580_v42, %v4584_v46  ;;  %v4595_v59 = vcombine.low %v4582_v44, %v612_v48  ;;  %v3724_v60 = vld [vmem:[#allocation7 + $0x60] sm:$0xff]   ;;  %v3078_v31 = vcombine.low %v4570_v22, %v4570_v22  ;;  %v686_v61 = vor.u32 %v685_v39, %v681_v23  ;;  %v618_v3 = vld [vmem:[#allocation2 + $0x20] sm:$0xe]  ;;  %v4602_v4 = vld [vmem:[#allocation2 + $0x28] sm:$0xf]  ;;  %p3164_p7 = scmp.ne.s32.totalorder %s4056_s24, 0 }
 0x1bb   : > { %v613_v6 = vld [vmem:[#allocation2 + $0x2c] sm:$0x1]  ;;  %v3086_v9 = vcombine.low %v599_v52, %v593_v47  ;;  %v594_v10 = vld [vmem:[#allocation2 + $0x1c] sm:$0x1]  ;;  %v3725_v11 = vld [vmem:[#allocation7 + $0x20] sm:$0xff]   ;;  %v894_v17 = vshrl.u32 %v4574_v26, 16  ;;  %v3099_v25 = vcombine.low %v618_v3, %v612_v48  ;;  %v693_v23 = vor.u32 %v692_v50, %v688_v49 }
 0x1bc   : > { %3316 = vmatpush3.bf16.msra.mxu0 %v3723_v54  ;;  %v619_v12 = vld [vmem:[#allocation2 + $0x28] sm:$0xe]  ;;  %v600_v13 = vld [vmem:[#allocation2 + $0x18] sm:$0xe]  ;;  %v4605_v15 = vcombine.low %v4523_v36, %v594_v10  ;;  %v903_v18 = vshll.u32 %v4595_v59, 16  ;;  %v4610_v19 = vcombine.low %v4602_v4, %v613_v6  ;;  %v892_v36 = vor.u32 %v891_v55, %v887_v51  ;;  %v3727_v43 = vld [vmem:[#allocation7 + $0xc0] sm:$0xff]  }
 0x1bd   : > { %700 = vrot.lane.b32.xlu1 %v679_v34, %s4080_s8  ;;  %756 = vrot.lane.b32.xlu0 %v3077_v35, %s4080_s8  ;;  %v3726_v16 = vld [vmem:[#allocation7 + $0x68] sm:$0xff]   ;;  %v4612_v20 = vld [vmem:[#allocation2 + $0x30] sm:$0xf]  ;;  %v614_v21 = vld [vmem:[#allocation2 + $0x34] sm:$0x1]  ;;  %v898_v24 = vrot.slane %v896_v56, 1  ;;  %v3100_v48 = vcombine.low %v619_v12, %v613_v6  ;;  %v3087_v52 = vcombine.low %v600_v13, %v594_v10 }
 0x1be   : > { %3317 = vmatprep.subr.bf16.mxu0 %v3724_v60  ;;  %v838_v27 = vrot.slane %v3085_v0, 1  ;;  %v601_v30 = vld [vmem:[#allocation2 + $0x20] sm:$0xe]  ;;  %v620_v34 = vld [vmem:[#allocation2 + $0x30] sm:$0xe]  ;;  %v839_v26 = vrot.slane %v3086_v9, 1  ;;  %v3095_v54 = vcombine.low %v4612_v20, %v614_v21  ;;  %3343 = vmatprep.subr.bf16.mxu1 %v3727_v43 }
 0x1bf   : > { %v4616_v35 = vld [vmem:[#allocation2 + $0x38] sm:$0xf]  ;;  %v615_v39 = vld [vmem:[#allocation2 + $0x3c] sm:$0x1]  ;;  %v901_v47 = vshrl.u32 %v4595_v59, 16  ;;  %v905_v50 = vrot.slane %v903_v18, 1  ;;  %v3088_v56 = vcombine.low %v601_v30, %v4504_v29  ;;  %v899_v59 = vor.u32 %v898_v24, %v894_v17 }
 0x1c0   : > { %3318 = vmatpush3.bf16.msra.mxu0 %v3725_v11  ;;  %v621_v60 = vld [vmem:[#allocation2 + $0x38] sm:$0xe]  ;;  %v4620_v51 = vrot.slane %v3099_v25, 1  ;;  %v910_v55 = vshll.u32 %v4610_v19, 16  ;;  %v3096_v0 = vcombine.low %v4616_v35, %v615_v39  ;;  %v596_v3 = vld [vmem:[#allocation2 + $0x2c] sm:$0x1] }
 0x1c1   : > { %758 = vrot.lane.b32.xlu1 %v3078_v31, %s4080_s8  ;;  %702 = vrot.lane.b32.xlu0 %v686_v61, %s4080_s8  ;;  %v3729_v49 = vld [vmem:[#allocation7 + $0x28] sm:$0xff]   ;;  %v3730_v31 = vld [vmem:[#allocation7 + $0x80] sm:$0xff]   ;;  %v3101_v61 = vcombine.low %v620_v34, %v614_v21  ;;  %v908_v9 = vshrl.u32 %v4610_v19, 16  ;;  %v3102_v10 = vcombine.low %v621_v60, %v615_v39  ;;  %v4629_v11 = vcombine.low %v4550_v5, %v596_v3  ;;  %v3731_v12 = vld [vmem:[#allocation7 + $0x70] sm:$0xff]  }
 0x1c2   : > { %3319 = vmatprep.subr.bf16.mxu0 %v3726_v16  ;;  %v597_v6 = vld [vmem:[#allocation2 + $0x34] sm:$0x1]  ;;  %3344 = vmatpush3.bf16.msra.mxu1 %v3730_v31  ;;  %v4634_v13 = vrot.slane %v3100_v48, 1  ;;  %v917_v16 = vshll.u32 %v3095_v54, 16  ;;  %v912_v17 = vrot.slane %v910_v55, 1  ;;  %v840_v18 = vrot.slane %v3087_v52, 1 }
 0x1c3   : > { %v4632_v29 = vcombine.low %v4570_v22, %v597_v6  ;;  %v841_v25 = vrot.slane %v3088_v56, 1  ;;  %v3732_v21 = vld [vmem:[#allocation7 + $0xc8] sm:$0xff]   ;;  %v906_v5 = vor.u32 %v905_v50, %v901_v47  ;;  %v915_v19 = vshrl.u32 %v3095_v54, 16  ;;  %v3738_v39 = vld [vmem:[#allocation7 + $0x78] sm:$0xff]   ;;  %v603_v48 = vld [vmem:[#allocation2 + $0x30] sm:$0xe] }
 0x1c4   : > { %3320 = vmatpush3.bf16.msra.mxu0 %v3729_v49  ;;  %v924_v22 = vshll.u32 %v3096_v0, 16  ;;  %v4640_v24 = vrot.slane %v3102_v10, 1  ;;  %3345 = vmatprep.subr.bf16.mxu1 %v3732_v21  ;;  %v3734_v30 = vld [vmem:[#allocation7 + $0x88] sm:$0xff]   ;;  %v919_v34 = vrot.slane %v917_v16, 1  ;;  %v602_v43 = vld [vmem:[#allocation2 + $0x28] sm:$0xe]  ;;  %v3113_v47 = vcombine.low %v4620_v51, %v4634_v13 }
 0x1c5   : > { %704 = vrot.lane.b32.xlu1 %v693_v23, %s4080_s8  ;;  %928 = vrot.lane.b32.xlu0 %v892_v36, %s4080_s8  ;;  %v4638_v23 = vrot.slane %v3101_v61, 1  ;;  %v3733_v36 = vld [vmem:[#allocation7 + $0x30] sm:$0xff]   ;;  %v922_v52 = vshrl.u32 %v3096_v0, 16  ;;  %v3089_v49 = vcombine.low %v602_v43, %v596_v3  ;;  %v3090_v55 = vcombine.low %v603_v48, %v597_v6  ;;  %v3740_v61 = vld [vmem:[#allocation7 + $0x38] sm:$0xff]   ;;  %v3745_v10 = vld [vmem:[#allocation7 + $0xe0] sm:$0xff]  }
 0x1c6   : > { %3321 = vmatprep.subr.bf16.mxu0 %v3731_v12  ;;  %3346 = vmatpush3.bf16.msra.mxu1 %v3734_v30  ;;  %v926_v54 = vrot.slane %v924_v22, 1  ;;  %v920_v60 = vor.u32 %v919_v34, %v915_v19  ;;  %v3739_v50 = vld [vmem:[#allocation7 + $0xd0] sm:$0xff]   ;;  %v3742_v3 = vld [vmem:[#allocation7 + $0xd8] sm:$0xff]   ;;  %v3748_v12 = vld [vmem:[#allocation7 + $0xa0] sm:$0xff]   ;;  %vm1683_vm9 = vcmask 1043456   ;;  %vm1688_vm10 = vcmask 1040384  }
 0x1c7   : > { %v842_v31 = vrot.slane %v3089_v49, 1  ;;  %3347 = vmatprep.subr.bf16.mxu1 %v3739_v50  ;;  %v3741_v0 = vld [vmem:[#allocation7 + $0x90] sm:$0xff]   ;;  %v3743_v6 = vld [vmem:[#allocation7 + $0x98] sm:$0xff]   ;;  %v3750_v16 = vld [vmem:[#allocation7 + $0xe8] sm:$0xff]  }
 0x1c8   : > { %3322 = vmatpush3.bf16.msra.mxu0 %v3733_v36  ;;  %v927_v56 = vor.u32 %v926_v54, %v922_v52  ;;  %v3755_v21 = vld [vmem:[#allocation7 + $0xf8] sm:$0xff]   ;;  %v579_v19 = vld [vmem:[#allocation2] sm:$0xe]  ;;  %v582_v34 = vld [vmem:[#allocation2 + $0x18] sm:$0xe] }
 0x1c9   : > { %930 = vrot.lane.b32.xlu1 %v899_v59, %s4080_s8  ;;  %844 = vrot.lane.b32.xlu0 %v838_v27, %s4080_s8  ;;  %v913_v27 = vor.u32 %v912_v17, %v908_v9  ;;  %v843_v59 = vrot.slane %v3090_v55, 1  ;;  %v4083_v9 = vmov 0.0   ;;  %v3751_v17 = vld [vmem:[#allocation7 + $0xa8] sm:$0xff]   ;;  %v580_v22 = vld [vmem:[#allocation2 + $0x8] sm:$0xe]  ;;  %v3067_v36 = vcombine.low %v579_v19, %v4513_v32  ;;  %vm4745_vm11 = vmand %vm1683_vm9, %vm327_vm3 }
 0x1ca   : > { %3323 = vmatprep.subr.bf16.mxu0 %v3738_v39  ;;  %3348 = vmatpush3.bf16.msra.mxu1 %v3741_v0  ;;  %v3068_v30 = vcombine.low %v580_v22, %v4525_v37  ;;  %v581_v39 = vld [vmem:[#allocation2 + $0x10] sm:$0xe]  ;;  %vm4751_vm12 = vmand %vm1688_vm10, %vm301_vm2 }
 0x1cb   : > { %3349 = vmatprep.subr.bf16.mxu1 %v3742_v3  ;;  %v3069_v48 = vcombine.low %v581_v39, %v4531_v40  ;;  %v724_v52 = vrot.slane %v3067_v36, 1  ;;  %v584_v3 = vld [vmem:[#allocation2 + $0x28] sm:$0xe]  ;;  %vm4769_vm13 = vmand %vm1688_vm10, %vm327_vm3 }
 0x1cc   : > { %3324 = vmatpush3.bf16.msra.mxu0 %v3740_v61  ;;  %v725_v54 = vrot.slane %v3068_v30, 1  ;;  %v583_v61 = vld [vmem:[#allocation2 + $0x20] sm:$0xe]  ;;  %v781_v30 = vshll.u32 %v4502_v28, 16 }
 0x1cd   : > { %846 = vrot.lane.b32.xlu1 %v839_v26, %s4080_s8  ;;  %932 = vrot.lane.b32.xlu0 %v906_v5, %s4080_s8  ;;  %v3118_v26 = vcombine.low %v4638_v23, %v4640_v24  ;;  %v3756_v5 = vld [vmem:[#allocation7 + $0xb8] sm:$0xff]   ;;  %v726_v55 = vrot.slane %v3069_v48, 1  ;;  %v3754_v48 = vld [vmem:[#allocation7 + $0x110] sm:$0xff]  }
 0x1ce   : > { %3506 = vmatprep.subr.bf16.mxu0 %v4083_v9  ;;  %3350 = vmatpush3.bf16.msra.mxu1 %v3743_v6  ;;  %v3071_v6 = vcombine.low %v583_v61, %v4546_v62  ;;  %v3749_v62 = vld [vmem:[#allocation7 + $0x108] sm:$0xff]   ;;  %v4736_v23 = vld [vmem:[%s4924_s2] ss:$0 sm:$0xff] }
 0x1cf   : > { %3351 = vmatprep.subr.bf16.mxu1 %v3745_v10 }
 0x1d1   : > { %934 = vrot.lane.b32.xlu1 %v913_v27, %s4080_s8  ;;  %848 = vrot.lane.b32.xlu0 %v840_v18, %s4080_s8  ;;  %v3752_v18 = vld [vmem:[#allocation7 + $0xf0] sm:$0xff]   ;;  %v3070_v27 = vcombine.low %v582_v34, %v4537_v45 }
 0x1d2   : > { %3352 = vmatpush3.bf16.msra.mxu1 %v3748_v12 }
 0x1d3   : > { %3353 = vmatprep.subr.bf16.mxu1 %v3750_v16  ;;  %v727_v50 = vrot.slane %v3070_v27, 1 }
 0x1d5   : > { %850 = vrot.lane.b32.xlu1 %v841_v25, %s4080_s8  ;;  %936 = vrot.lane.b32.xlu0 %v920_v60, %s4080_s8  ;;  %v3753_v25 = vld [vmem:[#allocation7 + $0xb0] sm:$0xff]  }
 0x1d6   : > { %3354 = vmatpush3.bf16.msra.mxu1 %v3751_v17 }
 0x1d7   : > { %3355 = vmatprep.subr.bf16.mxu1 %v3752_v18  ;;  %v3744_v18 = vld [vmem:[#allocation7 + $0x100] sm:$0xff]  }
 0x1d9   : > { %938 = vrot.lane.b32.xlu1 %v927_v56, %s4080_s8  ;;  %852 = vrot.lane.b32.xlu0 %v842_v31, %s4080_s8 }
 0x1da   : > { %3356 = vmatpush3.bf16.msra.mxu1 %v3753_v25  ;;  %v3072_v25 = vcombine.low %v584_v3, %v4554_v7 }
 0x1db   : > { %3357 = vmatprep.subr.bf16.mxu1 %v3755_v21 }
 0x1dc   : > { %v729_v36 = vrot.slane %v3072_v25, 1  ;;  %v809_v25 = vshll.u32 %v4629_v11, 16 }
 0x1dd   : > { %854 = vrot.lane.b32.xlu1 %v843_v59, %s4080_s8 }
 0x1de   : > { %3358 = vmatpush3.bf16.msra.mxu1 %v3756_v5  ;;  %v728_v5 = vrot.slane %v3071_v6, 1 }
 0x21f   : > { %v749_v43 = vpop.permute.xlu0 %748  ;;  %v755_v60 = vpop.permute.xlu1 %754 }
 0x220   : > { %v985_v56 = vsel %vm964_vm7, %v724_v52, %v749_v43  ;;  %v994_v45 = vsel %vm964_vm7, %v727_v50, %v755_v60  ;;  %v788_v43 = vshll.u32 %v4589_v53, 16  ;;  %v779_v52 = vshrl.u32 %v4502_v28, 16 }
 0x221   : > { %v786_v50 = vshrl.u32 %v4589_v53, 16 }
 0x223   : > { %v751_v49 = vpop.permute.xlu0 %750 }
 0x224   : > { %v988_v32 = vsel %vm964_vm7, %v725_v54, %v751_v49  ;;  %v783_v54 = vrot.slane %v781_v30, 1  ;;  %v807_v30 = vshrl.u32 %v4629_v11, 16 }
 0x225   : > { %v3105_v31 = vcombine.low %v985_v56, %v988_v32  ;;  %v3757_v56 = vld [vmem:[#allocation7 + $0x118] sm:$0xff]  }
 0x226   : > { %v784_v32 = vor.u32 %v783_v54, %v779_v52 }
 0x227   : > { %v695_v37 = vpop.permute.xlu1 %694  ;;  %v753_v59 = vpop.permute.xlu0 %752  ;;  %1454 = vmatprep.mubr.bf16.mxu0 %v3105_v31  ;;  %v795_v31 = vshll.u32 %v4605_v15, 16 }
 0x228   : > { %v991_v40 = vsel %vm964_vm7, %v726_v55, %v753_v59  ;;  %v967_v16 = vsel %vm964_vm7, %v4508_v1, %v695_v37  ;;  %v790_v55 = vrot.slane %v788_v43, 1 }
 0x229   : > { %v3110_v0 = vcombine.low %v991_v40, %v994_v45  ;;  %v802_v45 = vshll.u32 %v4511_v2, 16 }
 0x22b   : > { %v697_v10 = vpop.permute.xlu1 %696  ;;  %v699_v12 = vpop.permute.xlu0 %698 }
 0x22c   : > { %v970_v17 = vsel %vm964_vm7, %v4515_v33, %v697_v10  ;;  %v973_v1 = vsel %vm964_vm7, %v4527_v38, %v699_v12  ;;  %v793_v10 = vshrl.u32 %v4605_v15, 16 }
 0x22d   : > { %v3104_v21 = vcombine.low %v967_v16, %v970_v17  ;;  %v800_v16 = vshrl.u32 %v4511_v2, 16  ;;  %v804_v17 = vrot.slane %v802_v45, 1  ;;  %v816_v2 = vshll.u32 %v4632_v29, 16 }
 0x22f   : > { %1455 = vmatmul.mubr.bf16.vlgmr.msra.gmra.mrb[0].mxu0 %v3104_v21  ;;  %v701_v19 = vpop.permute.xlu1 %700  ;;  %v757_v22 = vpop.permute.xlu0 %756 }
 0x230   : > { %1462 = vmatprep.mubr.bf16.mxu0 %v3110_v0  ;;  %3507 = vmatpush3.bf16.msra.mxu0 %v3744_v18  ;;  %v976_v33 = vsel %vm964_vm7, %v4533_v41, %v701_v19  ;;  %v997_v7 = vsel %vm964_vm7, %v728_v5, %v757_v22  ;;  %v791_v0 = vor.u32 %v790_v55, %v786_v50 }
 0x231   : > { %3508 = vmatprep.subr.bf16.mxu0 %v4083_v9  ;;  %v3109_v60 = vcombine.low %v973_v1, %v976_v33  ;;  %v805_v22 = vor.u32 %v804_v17, %v800_v16  ;;  %v811_v1 = vrot.slane %v809_v25, 1 }
 0x233   : > { %v759_v34 = vpop.permute.xlu1 %758  ;;  %v703_v39 = vpop.permute.xlu0 %702 }
 0x234   : > { %v1000_v27 = vsel %vm964_vm7, %v729_v36, %v759_v34  ;;  %3509 = vmatpush3.bf16.msra.mxu0 %v3749_v62  ;;  %v979_v28 = vsel %vm964_vm7, %v4544_v58, %v703_v39  ;;  %v797_v58 = vrot.slane %v795_v31, 1  ;;  %v814_v34 = vshrl.u32 %v4632_v29, 16 }
 0x235   : > { %v3115_v49 = vcombine.low %v997_v7, %v1000_v27  ;;  %3510 = vmatprep.subr.bf16.mxu0 %v4083_v9  ;;  %v818_v39 = vrot.slane %v816_v2, 1  ;;  %v812_v27 = vor.u32 %v811_v1, %v807_v30 }
 0x236   : > { %v798_v21 = vor.u32 %v797_v58, %v793_v10 }
 0x237   : > { %1463 = vmatmul.mubr.bf16.gmra.mrb[4].mxu0 %v3109_v60  ;;  %v705_v38 = vpop.permute.xlu1 %704  ;;  %v929_v41 = vpop.permute.xlu0 %928 }
 0x238   : > { %1470 = vmatprep.mubr.bf16.mxu0 %v3115_v49  ;;  %3511 = vmatpush3.bf16.msra.mxu0 %v3754_v48  ;;  %v982_v37 = vsel %vm964_vm7, %v4548_v63, %v705_v38  ;;  %v1021_v59 = vsel %vm964_vm7, %v4556_v8, %v929_v41 }
 0x239   : > { %3512 = vmatprep.subr.bf16.mxu0 %v4083_v9  ;;  %v3114_v3 = vcombine.low %v979_v28, %v982_v37 }
 0x23b   : > { %v931_v61 = vpop.permute.xlu1 %930  ;;  %v845_v53 = vpop.permute.xlu0 %844 }
 0x23c   : > { %v1024_v40 = vsel %vm964_vm7, %v4564_v14, %v931_v61  ;;  %3513 = vmatpush3.bf16.msra.mxu0 %v3757_v56  ;;  %v1003_v12 = vsel %vm964_vm7, %v784_v32, %v845_v53 }
 0x23d   : > { %v3107_v6 = vcombine.low %v1021_v59, %v1024_v40 }
 0x23f   : > { %1471 = vmatmul.mubr.bf16.gmra.mrb[8].mxu0 %v3114_v3  ;;  %1511 = vmatprep.mubr.bf16.mxu1 %v3107_v6  ;;  %v847_v63 = vpop.permute.xlu1 %846  ;;  %v933_v8 = vpop.permute.xlu0 %932 }
 0x240   : > { %v1006_v18 = vsel %vm964_vm7, %v791_v0, %v847_v63  ;;  %3514 = vmatprep.mubr.msk.bf16.mxu0 %vm4084_vm8, %v4083_v9  ;;  %v1027_v15 = vsel %vm964_vm7, %v4582_v44, %v933_v8 }
 0x241   : > { %v3106_v14 = vcombine.low %v1003_v12, %v1006_v18 }
 0x243   : > { %1512 = vmatmul.mubr.bf16.vlgmr.msra.gmra.mrb[0].mxu1 %v3106_v14  ;;  %v935_v5 = vpop.permute.xlu1 %934  ;;  %v849_v19 = vpop.permute.xlu0 %848 }
 0x244   : > { %v1030_v36 = vsel %vm964_vm7, %v4602_v4, %v935_v5  ;;  %v1009_v33 = vsel %vm964_vm7, %v798_v21, %v849_v19 }
 0x245   : > { %v3112_v62 = vcombine.low %v1027_v15, %v1030_v36 }
 0x247   : > { %1519 = vmatprep.mubr.bf16.mxu1 %v3112_v62  ;;  %3515 = vmatmul.mubr.msk.bf16.vlgmr.msra.gmra.mrb[12].mxu0 %vm964_vm7, %v3108_v57  ;;  %v851_v44 = vpop.permute.xlu1 %850  ;;  %v937_v7 = vpop.permute.xlu0 %936  ;;  %v819_v57 = vor.u32 %v818_v39, %v814_v34 }
 0x248   : > { %v1012_v43 = vsel %vm964_vm7, %v805_v22, %v851_v44  ;;  %3518 = vmatprep.mubr.msk.bf16.mxu0 %vm4084_vm8, %v4083_v9  ;;  %v1033_v11 = vsel %vm964_vm7, %v4612_v20, %v937_v7 }
 0x249   : > { %v3111_v4 = vcombine.low %v1009_v33, %v1012_v43 }
 0x24b   : > { %1520 = vmatmul.mubr.bf16.gmra.mrb[4].mxu1 %v3111_v4  ;;  %v939_v48 = vpop.permute.xlu1 %938  ;;  %v853_v42 = vpop.permute.xlu0 %852 }
 0x24c   : > { %v1036_v46 = vsel %vm964_vm7, %v4616_v35, %v939_v48  ;;  %v1015_v29 = vsel %vm964_vm7, %v812_v27, %v853_v42 }
 0x24d   : > { %v3117_v52 = vcombine.low %v1033_v11, %v1036_v46  ;;  %v1685_v46 = vld [vmem:[#allocation3] sm:$0xf] }
 0x24f   : > { %1527 = vmatprep.mubr.bf16.mxu1 %v3117_v52  ;;  %3519 = vmatmul.mubr.msk.bf16.gmra.mrb[16].mxu0 %vm964_vm7, %v3113_v47  ;;  %v855_v54 = vpop.permute.xlu1 %854  ;;  %v1690_v52 = vld [vmem:[#allocation3 + $0x4] sm:$0x1] }
 0x250   : > { %v1018_v20 = vsel %vm964_vm7, %v819_v57, %v855_v54  ;;  %3522 = vmatprep.mubr.msk.bf16.mxu0 %vm4084_vm8, %v4083_v9 }
 0x251   : > { %v3116_v60 = vcombine.low %v1015_v29, %v1018_v20 }
 0x253   : > { %1528 = vmatmul.mubr.bf16.gmra.mrb[8].mxu1 %v3116_v60 }
 0x257   : > { %3523 = vmatmul.mubr.msk.bf16.gmra.mrb[20].mxu0 %vm964_vm7, %v3118_v26 }
 0x302   : > { %v3325_v35 = vpop.f32.mrb[0].mxu0 }
 0x303   : > { %v3326_v49 = vpop.f32.mrb[1].mxu0 }
 0x304   : > { %v3327_v38 = vadd.f32 %v3326_v49, %v3325_v35  ;;  %v3328_v41 = vpop.f32.mrb[2].mxu0 }
 0x305   : > { %v3329_v51 = vpop.f32.mrb[3].mxu0 }
 0x306   : > { %v3330_v13 = vadd.f32 %v3329_v51, %v3328_v41  ;;  %v1457_v45 = vadd.f32 %v3327_v38, %v4736_v23  ;;  %v1693_v51 = vld [vmem:[#allocation3 + $0x8] sm:$0xf] }
 0x308   : > { %v1460_v6 = vadd.f32 %v3330_v13, %v4736_v23  ;;  %v1696_v13 = vld [vmem:[#allocation3 + $0xc] sm:$0x1] }
 0x30a   : > { %v3331_v47 = vpop.f32.mrb[4].mxu0 }
 0x30b   : > { %v3332_v50 = vpop.f32.mrb[5].mxu0 }
 0x30c   : > { %v3333_v55 = vadd.f32 %v3332_v50, %v3331_v47  ;;  %v3334_v56 = vpop.f32.mrb[6].mxu0 }
 0x30d   : > { %v3335_v32 = vpop.f32.mrb[7].mxu0 }
 0x30e   : > { %v3336_v31 = vadd.f32 %v3335_v32, %v3334_v56  ;;  %v1465_v36 = vadd.f32 %v3333_v55, %v4736_v23 }
 0x310   : > { %v1468_v30 = vadd.f32 %v3336_v31, %v4736_v23 }
 0x312   : > { %v3337_v9 = vpop.f32.mrb[8].mxu0 }
 0x313   : > { %v3338_v28 = vpop.f32.mrb[9].mxu0 }
 0x314   : > { %v4731_v37 = vadd.f32 %v3338_v28, %v3337_v9  ;;  %v3340_v59 = vpop.f32.mrb[10].mxu0 }
 0x315   : > { %v3341_v24 = vpop.f32.mrb[11].mxu0 }
 0x316   : > { %v4738_v26 = vadd.f32 %v3341_v24, %v3340_v59  ;;  %v3359_v61 = vpop.f32.mrb[0].mxu1  ;;  %v1473_v28 = vadd.f32 %v4731_v37, %v4736_v23 }
 0x317   : > { %v3360_v53 = vpop.f32.mrb[1].mxu1 }
 0x318   : > { %v3361_v40 = vadd.f32 %v3360_v53, %v3359_v61  ;;  %v3362_v0 = vpop.f32.mrb[2].mxu1 }
 0x319   : > { %v3363_v3 = vpop.f32.mrb[3].mxu1 }
 0x31a   : > { %v3364_v10 = vadd.f32 %v3363_v3, %v3362_v0  ;;  %v1514_v58 = vadd.f32 %v3361_v40, %v1457_v45  ;;  %v1570_v12 = vpop.f32.mrb[12].mxu0  ;;  %v1476_v45 = vadd.f32 %v4738_v26, %v4736_v23 }
 0x31b   : > { %v3516_v63 = vpop.f32.mrb[13].mxu0 }
 0x31c   : > { %v1571_v8 = vadd.f32 %v1570_v12, %v1514_v58  ;;  %v1517_v16 = vadd.f32 %v3364_v10, %v1460_v6  ;;  %v1573_v17 = vpop.f32.mrb[14].mxu0 }
 0x31d   : > { %v3517_v18 = vpop.f32.mrb[15].mxu0 }
 0x31e   : > { %v1593_v14 = vmax.f32 %v1571_v8, 0.0  ;;  %v1574_v25 = vadd.f32 %v1573_v17, %v1517_v16  ;;  %v3365_v15 = vpop.f32.mrb[4].mxu1 }
 0x31f   : > { %v3366_v21 = vpop.f32.mrb[5].mxu1 }
 0x320   : > { %v3292_v5 = vpack.c.bf16 %v1593_v14, %v1593_v14  ;;  %v1594_v19 = vmax.f32 %v1574_v25, 0.0  ;;  %v3367_v22 = vadd.f32 %v3366_v21, %v3365_v15  ;;  %v3368_v2 = vpop.f32.mrb[6].mxu1  ;;  %v1699_v25 = vld [vmem:[#allocation3 + $0x10] sm:$0xf]  ;;  %v1702_v15 = vld [vmem:[#allocation3 + $0x14] sm:$0x1] }
 0x321   : > { %v3369_v62 = vpop.f32.mrb[7].mxu1 }
 0x322   : > { %v1624_v1 = vshrl.u32 %v3292_v5, 16  ;;  %v3293_v33 = vpack.c.bf16 %v1594_v19, %v1594_v19  ;;  %v3370_v44 = vadd.f32 %v3369_v62, %v3368_v2  ;;  %v1578_v7 = vpop.f32.mrb[16].mxu0  ;;  %v1522_v34 = vadd.f32 %v3367_v22, %v1465_v36 }
 0x323   : > { %v3520_v39 = vpop.f32.mrb[17].mxu0  ;;  %v1627_v4 = vshll.u32 %v3292_v5, 16 }
 0x324   : > { %v1626_v43 = vrot.slane %v1624_v1, 7  ;;  %v1632_v27 = vshrl.u32 %v3293_v33, 16  ;;  %v1525_v48 = vadd.f32 %v3370_v44, %v1468_v30  ;;  %v1581_v42 = vpop.f32.mrb[18].mxu0  ;;  %v1635_v29 = vshll.u32 %v3293_v33, 16  ;;  %v1705_v39 = vld [vmem:[#allocation3 + $0x18] sm:$0xf] }
 0x325   : > { %v1579_v54 = vadd.f32 %v1578_v7, %v1522_v34  ;;  %v3521_v20 = vpop.f32.mrb[19].mxu0 }
 0x326   : > { %v1629_v60 = vor.u32 %v1627_v4, %v1626_v43  ;;  %v1630_v35 = vrot.slane %v1626_v43, 4  ;;  %v1634_v49 = vrot.slane %v1632_v27, 7  ;;  %v1582_v38 = vadd.f32 %v1581_v42, %v1525_v48  ;;  %v3371_v41 = vpop.f32.mrb[8].mxu1  ;;  %v1708_v43 = vld [vmem:[#allocation3 + $0x1c] sm:$0x1] }
 0x327   : > { %v1595_v47 = vmax.f32 %v1579_v54, 0.0  ;;  %v3372_v50 = vpop.f32.mrb[9].mxu1 }
 0x328   : > { %v1686_v55 = vsel %vm4745_vm11, %v1629_v60, %v1685_v46  ;;  %v1691_v56 = vsel %vm4751_vm12, %v1630_v35, %v1690_v52  ;;  %v1637_v32 = vor.u32 %v1635_v29, %v1634_v49  ;;  %v1638_v31 = vrot.slane %v1634_v49, 4  ;;  %v3374_v9 = vpop.f32.mrb[10].mxu1 }
 0x329   : > { %1687 = vst [vmem:[#allocation3] sm:$0xf] %v1686_v55  ;;  %1692 = vst [vmem:[#allocation3 + $0x4] sm:$0x1] %v1691_v56  ;;  %v3294_v59 = vpack.c.bf16 %v1595_v47, %v1595_v47  ;;  %v1596_v24 = vmax.f32 %v1582_v38, 0.0  ;;  %v3373_v61 = vadd.f32 %v3372_v50, %v3371_v41  ;;  %v3375_v53 = vpop.f32.mrb[11].mxu1 }
 0x32a   : > { %v1694_v40 = vsel %vm4745_vm11, %v1637_v32, %v1693_v51  ;;  %v1697_v0 = vsel %vm4751_vm12, %v1638_v31, %v1696_v13  ;;  %v3376_v3 = vadd.f32 %v3375_v53, %v3374_v9  ;;  %v1586_v6 = vpop.f32.mrb[20].mxu0  ;;  %v1711_v51 = vld [vmem:[#allocation3 + $0x20] sm:$0xf]  ;;  %v1714_v13 = vld [vmem:[#allocation3 + $0x24] sm:$0x1] }
 0x32b   : > { %1695 = vst [vmem:[#allocation3 + $0x8] sm:$0xf] %v1694_v40  ;;  %1698 = vst [vmem:[#allocation3 + $0xc] sm:$0x1] %v1697_v0  ;;  %v1640_v37 = vshrl.u32 %v3294_v59, 16  ;;  %v3295_v10 = vpack.c.bf16 %v1596_v24, %v1596_v24  ;;  %v1530_v58 = vadd.f32 %v3373_v61, %v1473_v28  ;;  %v3524_v12 = vpop.f32.mrb[21].mxu0 }
 0x32c   : > { %v1533_v63 = vadd.f32 %v3376_v3, %v1476_v45  ;;  %v1589_v8 = vpop.f32.mrb[22].mxu0  ;;  %v1643_v17 = vshll.u32 %v3294_v59, 16  ;;  %v1717_v32 = vld [vmem:[#allocation3 + $0x28] sm:$0xf]  ;;  %v1720_v31 = vld [vmem:[#allocation3 + $0x2c] sm:$0x1] }
 0x32d   : > { %v1642_v16 = vrot.slane %v1640_v37, 7  ;;  %v1648_v18 = vshrl.u32 %v3295_v10, 16  ;;  %v1587_v23 = vadd.f32 %v1586_v6, %v1530_v58  ;;  %v3525_v26 = vpop.f32.mrb[23].mxu0  ;;  %v1651_v30 = vshll.u32 %v3295_v10, 16 }
 0x32e   : > { %v1590_v21 = vadd.f32 %v1589_v8, %v1533_v63  ;;  %v4085_v26 = vmov (!%p3164_p7), 0  }
 0x32f   : > { %v1645_v5 = vor.u32 %v1643_v17, %v1642_v16  ;;  %v1646_v19 = vrot.slane %v1642_v16, 4  ;;  %v1650_v22 = vrot.slane %v1648_v18, 7  ;;  %v1597_v2 = vmax.f32 %v1587_v23, 0.0 }
 0x330   : > { %v1723_v36 = vld [vmem:[#allocation3] sm:$0x1]  ;;  %v1742_v62 = vld [vmem:[#allocation3 + $0x4] sm:$0x1]  ;;  %v1598_v1 = vmax.f32 %v1590_v21, 0.0 }
 0x331   : > { %v1724_v33 = vsel %vm4751_vm12, 0, %v1723_v36  ;;  %v1743_v44 = vsel %vm4769_vm13, 0, %v1742_v62  ;;  %v1700_v7 = vsel %vm4745_vm11, %v1645_v5, %v1699_v25  ;;  %v1703_v34 = vsel %vm4751_vm12, %v1646_v19, %v1702_v15 }
 0x332   : > { %1725 = vst [vmem:[#allocation3] sm:$0x1] %v1724_v33  ;;  %1744 = vst [vmem:[#allocation3 + $0x4] sm:$0x1] %v1743_v44  ;;  %v1726_v4 = vld [vmem:[#allocation3 + $0x8] sm:$0x1]  ;;  %v1653_v48 = vor.u32 %v1651_v30, %v1650_v22  ;;  %v3296_v46 = vpack.c.bf16 %v1597_v2, %v1597_v2  ;;  %v3297_v52 = vpack.c.bf16 %v1598_v1, %v1598_v1 }
 0x333   : > { %v1745_v27 = vld [vmem:[#allocation3 + $0xc] sm:$0x1]  ;;  %1701 = vst [vmem:[#allocation3 + $0x10] sm:$0xf] %v1700_v7  ;;  %1704 = vst [vmem:[#allocation3 + $0x14] sm:$0x1] %v1703_v34 }
 0x334   : > { %v1654_v42 = vrot.slane %v1650_v22, 4  ;;  %v1727_v29 = vsel %vm4751_vm12, 0, %v1726_v4  ;;  %v1746_v54 = vsel %vm4769_vm13, 0, %v1745_v27  ;;  %v1706_v20 = vsel %vm4745_vm11, %v1653_v48, %v1705_v39  ;;  %1764 = vst [vmem:[#allocation3] sm:$0xf] (!%p3164_p7), %v4085_v26 }
 0x335   : > { %1728 = vst [vmem:[#allocation3 + $0x8] sm:$0x1] %v1727_v29  ;;  %1747 = vst [vmem:[#allocation3 + $0xc] sm:$0x1] %v1746_v54  ;;  %v1656_v35 = vshrl.u32 %v3296_v46, 16  ;;  %v1664_v49 = vshrl.u32 %v3297_v52, 16 }
 0x336   : > { %v1709_v60 = vsel %vm4751_vm12, %v1654_v42, %v1708_v43  ;;  %1707 = vst [vmem:[#allocation3 + $0x18] sm:$0xf] %v1706_v20  ;;  %v1659_v41 = vshll.u32 %v3296_v46, 16  ;;  %v1667_v50 = vshll.u32 %v3297_v52, 16  ;;  %1765 = vst [vmem:[#allocation3 + $0x4] sm:$0x1] (!%p3164_p7), %v4085_v26 }
 0x337   : > { %1710 = vst [vmem:[#allocation3 + $0x1c] sm:$0x1] %v1709_v60  ;;  %v1658_v38 = vrot.slane %v1656_v35, 7  ;;  %v1666_v47 = vrot.slane %v1664_v49, 7 }
 0x339   : > { %v1661_v55 = vor.u32 %v1659_v41, %v1658_v38  ;;  %v1662_v56 = vrot.slane %v1658_v38, 4  ;;  %v1669_v59 = vor.u32 %v1667_v50, %v1666_v47  ;;  %v1670_v24 = vrot.slane %v1666_v47, 4 }
 0x33a   : > { %v1729_v9 = vld [vmem:[#allocation3 + $0x10] sm:$0x1]  ;;  %v1748_v28 = vld [vmem:[#allocation3 + $0x14] sm:$0x1] }
 0x33b   : > { %v1730_v61 = vsel %vm4751_vm12, 0, %v1729_v9  ;;  %v1749_v53 = vsel %vm4769_vm13, 0, %v1748_v28  ;;  %v1712_v45 = vsel %vm4745_vm11, %v1661_v55, %v1711_v51  ;;  %v1715_v40 = vsel %vm4751_vm12, %v1662_v56, %v1714_v13 }
 0x33c   : > { %1731 = vst [vmem:[#allocation3 + $0x10] sm:$0x1] %v1730_v61  ;;  %1750 = vst [vmem:[#allocation3 + $0x14] sm:$0x1] %v1749_v53  ;;  %v1718_v0 = vsel %vm4745_vm11, %v1669_v59, %v1717_v32  ;;  %v1721_v3 = vsel %vm4751_vm12, %v1670_v24, %v1720_v31 }
 0x33d   : > { %1713 = vst [vmem:[#allocation3 + $0x20] sm:$0xf] %v1712_v45  ;;  %1716 = vst [vmem:[#allocation3 + $0x24] sm:$0x1] %v1715_v40  ;;  %v1732_v6 = vld [vmem:[#allocation3 + $0x18] sm:$0x1] }
 0x33e   : > { %v1751_v37 = vld [vmem:[#allocation3 + $0x1c] sm:$0x1]  ;;  %1719 = vst [vmem:[#allocation3 + $0x28] sm:$0xf] %v1718_v0  ;;  %1722 = vst [vmem:[#allocation3 + $0x2c] sm:$0x1] %v1721_v3 }
 0x33f   : > { %v1733_v10 = vsel %vm4751_vm12, 0, %v1732_v6  ;;  %v1752_v58 = vsel %vm4769_vm13, 0, %v1751_v37 }
 0x340   : > { %1734 = vst [vmem:[#allocation3 + $0x18] sm:$0x1] %v1733_v10  ;;  %1753 = vst [vmem:[#allocation3 + $0x1c] sm:$0x1] %v1752_v58 }
 0x341   : > { %1763 = sbr.rel (%p3164_p7) target bundleno = 840 (0x348), region = 64 }
 0x344   : > { %v1735_v12 = vld [vmem:[#allocation3 + $0x20] sm:$0x1]  ;;  %v1754_v63 = vld [vmem:[#allocation3 + $0x24] sm:$0x1] }
 0x345   : > { %v1736_v11 = vsel %vm4751_vm12, 0, %v1735_v12  ;;  %v1755_v8 = vsel %vm4769_vm13, 0, %v1754_v63  ;;  %v1738_v16 = vld [vmem:[#allocation3 + $0x28] sm:$0x1]  ;;  %v1757_v17 = vld [vmem:[#allocation3 + $0x2c] sm:$0x1] }
 0x346   : > { %1737 = vst [vmem:[#allocation3 + $0x20] sm:$0x1] %v1736_v11  ;;  %1756 = vst [vmem:[#allocation3 + $0x24] sm:$0x1] %v1755_v8  ;;  %v1739_v18 = vsel %vm4751_vm12, 0, %v1738_v16  ;;  %v1758_v23 = vsel %vm4769_vm13, 0, %v1757_v17 }
 0x347   : > { %1740 = vst [vmem:[#allocation3 + $0x28] sm:$0x1] %v1739_v18  ;;  %1759 = vst [vmem:[#allocation3 + $0x2c] sm:$0x1] %v1758_v23 }
 0x348 PF: > { %p3165_p13 = scmp.ne.s32.totalorder %s4056_s24, 1 }
 0x349   : > { %v4086_v25 = vmov (!%p3165_p13), 0  }
 0x34a   : > { %1769 = sbr.rel (%p3165_p13) target bundleno = 849 (0x351), region = 68  ;;  %1771 = vst [vmem:[#allocation3 + $0x28] sm:$0xf] (!%p3165_p13), %v4086_v25  ;;  %1772 = vst [vmem:[#allocation3 + $0x2c] sm:$0x1] (!%p3165_p13), %v4086_v25 }
 0x351 PF: > { %v3758_v57 = vld [vmem:[#allocation9 + $0x40] sm:$0xff]   ;;  %v3762_v5 = vld [vmem:[#allocation9 + $0x48] sm:$0xff]   ;;  %v3766_v36 = vld [vmem:[#allocation9 + $0x50] sm:$0xff]   ;;  %s3283_s15 = sshll.u32 %s4060_s25, 3  ;;  %s4978_s6 = sld [smem:[#allocation16_spill]] }
 0x352   : > { %v3759_v15 = vld [vmem:[#allocation9] sm:$0xff]   ;;  %3384 = vmatprep.subr.bf16.mxu1 %v3758_v57  ;;  %v3763_v19 = vld [vmem:[#allocation9 + $0x8] sm:$0xff]   ;;  %v3767_v62 = vld [vmem:[#allocation9 + $0x10] sm:$0xff]   ;;  %s2916_s26 = sadd.s32 %s3283_s15, %s3047_s29  ;;  %s2919_s17 = sshll.u32 %s4471_s30, 4  ;;  %s4848_s17 = int_to_ptr.vmem [resolvable:$true] %s2919_s17 }
 0x353   : > { %v3760_v14 = vld [vmem:[#allocation9 + $0xc0] sm:$0xff]   ;;  %3385 = vmatpush3.bf16.msra.mxu1 %v3759_v15  ;;  %v3764_v22 = vld [vmem:[#allocation9 + $0xc8] sm:$0xff]   ;;  %v3768_v30 = vld [vmem:[#allocation9 + $0xd0] sm:$0xff]   ;;  %s3284_s16 = sshll.u32 %s2916_s26, 6  ;;  %s4979_s29 = sld [smem:[#allocation21_spill]] }
 0x354   : > { %v3761_v21 = vld [vmem:[#allocation9 + $0x80] sm:$0xff]   ;;  %3412 = vmatprep.subr.bf16.mxu0 %v3760_v14  ;;  %3386 = vmatprep.subr.bf16.mxu1 %v3762_v5  ;;  %v3765_v2 = vld [vmem:[#allocation9 + $0x88] sm:$0xff]   ;;  %v3769_v1 = vld [vmem:[#allocation9 + $0x90] sm:$0xff]   ;;  %s4859_s5 = scalar_lea.sflag [#allocation6], %s283_s11  ;;  %s3946_s18 = scalar_lea.vmem %s4848_s17, 256 }
 0x355   : > { %3413 = vmatpush3.bf16.msra.mxu0 %v3761_v21  ;;  %v3770_v33 = vld [vmem:[#allocation9 + $0x58] sm:$0xff]   ;;  %v3774_v39 = vld [vmem:[#allocation9 + $0x60] sm:$0xff]   ;;  %v3778_v48 = vld [vmem:[#allocation9 + $0x68] sm:$0xff]   ;;  %p3947_p9 = scmp.ne.s32.totalorder %s4848_s17, %s3946_s18  ;;  %s4087_s7 = smov [#allocation10]  }
 0x356   : > { %3414 = vmatprep.subr.bf16.mxu0 %v3764_v22  ;;  %v3771_v44 = vld [vmem:[#allocation9 + $0x18] sm:$0xff]   ;;  %v3775_v43 = vld [vmem:[#allocation9 + $0x20] sm:$0xff]   ;;  %v3779_v42 = vld [vmem:[#allocation9 + $0x28] sm:$0xff]   ;;  %s3950_s1 = sshll.u32 %s4087_s7, 4  ;;  %s3951_s1 = int_to_ptr.vmem [resolvable:$false] %s3950_s1 }
 0x357   : > { %3387 = vmatpush3.bf16.msra.mxu1 %v3763_v19  ;;  %v3772_v7 = vld [vmem:[#allocation9 + $0xd8] sm:$0xff]   ;;  %v3776_v4 = vld [vmem:[#allocation9 + $0xe0] sm:$0xff]   ;;  %v3780_v46 = vld [vmem:[#allocation9 + $0xe8] sm:$0xff]   ;;  %p4980_p11 = scmp.ne.s32.totalorder %s4978_s6, 0  ;;  %s3952_s9 = scalar_lea.vmem %s3951_s1, 512 }
 0x358   : > { %3388 = vmatprep.subr.bf16.mxu1 %v3766_v36  ;;  %v3773_v34 = vld [vmem:[#allocation9 + $0x98] sm:$0xff]   ;;  %v3777_v27 = vld [vmem:[#allocation9 + $0xa0] sm:$0xff]   ;;  %v3781_v52 = vld [vmem:[#allocation9 + $0xa8] sm:$0xff]   ;;  %p3953_p8 = scmp.lt.s32.totalorder %s4848_s17, %s3951_s1  ;;  %p3954_p12 = scmp.lt.s32.totalorder %s3952_s9, %s3946_s18 }
 0x359   : > { %3415 = vmatpush3.bf16.msra.mxu0 %v3765_v2  ;;  %v3782_v29 = vld [vmem:[#allocation9 + $0x70] sm:$0xff]   ;;  %v3786_v35 = vld [vmem:[#allocation9 + $0x78] sm:$0xff]   ;;  %v3793_v9 = vld [vmem:[#allocation9 + $0x140] sm:$0xff]   ;;  %s4853_s13 = scalar_lea.hbm %s4979_s29, %s3284_s16  ;;  %p3948_p0 = pnand %p3947_p9, %p4980_p11 }
 0x35a   : > { %3416 = vmatprep.subr.bf16.mxu0 %v3768_v30  ;;  %v3783_v54 = vld [vmem:[#allocation9 + $0x30] sm:$0xff]   ;;  %v3787_v49 = vld [vmem:[#allocation9 + $0x38] sm:$0xff]   ;;  %v1787_v61 = vld [vmem:[#allocation3 + $0x10] sm:$0xf]  ;;  %p3955_p2 = por %p3954_p12, %p3953_p8 }
 0x35b   : > { %3389 = vmatpush3.bf16.msra.mxu1 %v3767_v62  ;;  %v3784_v20 = vld [vmem:[#allocation9 + $0xf0] sm:$0xff]   ;;  %v3788_v38 = vld [vmem:[#allocation9 + $0xf8] sm:$0xff]   ;;  %v3802_v40 = vld [vmem:[#allocation9 + $0x1c0] sm:$0xff]   ;;  %p3949_p5 = pneg %p3948_p0 }
 0x35c   : > { %3390 = vmatprep.subr.bf16.mxu1 %v3770_v33  ;;  %v3785_v60 = vld [vmem:[#allocation9 + $0xb0] sm:$0xff]   ;;  %v1774_v51 = vld [vmem:[#allocation3 + $0x8] sm:$0xf]  ;;  %v1778_v47 = vld [vmem:[#allocation3 + $0xc] sm:$0x1] }
 0x35d   : > { %3417 = vmatpush3.bf16.msra.mxu0 %v3769_v1  ;;  %v1773_v41 = vld [vmem:[#allocation3] sm:$0xf]  ;;  %v1777_v13 = vld [vmem:[#allocation3 + $0x4] sm:$0x1]  ;;  %v3167_v55 = vcombine.low %v1774_v51, %v1778_v47  ;;  %v3791_v56 = vld [vmem:[#allocation9 + $0xb8] sm:$0xff]   ;;  %p3956_p6 = pnand %p3955_p2, %p3949_p5 }
 0x35e   : > { %3418 = vmatprep.subr.bf16.mxu0 %v3772_v7  ;;  %v3166_v50 = vcombine.low %v1773_v41, %v1777_v13  ;;  %v1786_v28 = vld [vmem:[#allocation3 + $0x8] sm:$0xf]  ;;  %v1781_v6 = vld [vmem:[#allocation3] sm:$0xe]  ;;  %v3191_v58 = vcombine.low %v1773_v41, %v1774_v51  ;;  %v3799_v12 = vld [vmem:[#allocation9 + $0x100] sm:$0xff]  }
 0x35f   : > { %3391 = vmatpush3.bf16.msra.mxu1 %v3771_v44  ;;  %v1839_v59 = vshrl.u32 %v3167_v55, 16  ;;  %v1841_v24 = vshll.u32 %v3167_v55, 16  ;;  %v3194_v45 = vcombine.low %v1786_v28, %v1787_v61  ;;  %v1782_v10 = vld [vmem:[#allocation3 + $0x8] sm:$0xe]  ;;  %v3170_v63 = vcombine.low %v1781_v6, %v1777_v13  ;;  %v3803_v16 = vld [vmem:[#allocation9 + $0x180] sm:$0xff]   ;;  %v3804_v17 = vld [vmem:[#allocation9 + $0x148] sm:$0xff]  }
 0x360   : > { %3392 = vmatprep.subr.bf16.mxu1 %v3774_v39  ;;  %v1832_v32 = vshrl.u32 %v3166_v50, 16  ;;  %v1834_v31 = vshll.u32 %v3166_v50, 16  ;;  %v3171_v11 = vcombine.low %v1782_v10, %v1778_v47  ;;  %v3805_v26 = vld [vmem:[#allocation9 + $0x108] sm:$0xff]   ;;  %v3808_v14 = vld [vmem:[#allocation9 + $0x150] sm:$0xff]   ;;  %v1790_v5 = vld [vmem:[#allocation3 + $0xc] sm:$0x1] }
 0x361   : > { %3419 = vmatpush3.bf16.msra.mxu0 %v3773_v34  ;;  %v1843_v0 = vrot.slane %v1841_v24, 1  ;;  %2727 = vmatprep.mubr.bf16.mxu0 %v3194_v45  ;;  %v1871_v18 = vrot.slane %v3170_v63, 1  ;;  %v3806_v57 = vld [vmem:[#allocation9 + $0x1c8] sm:$0xff]   ;;  %v3809_v21 = vld [vmem:[#allocation9 + $0x110] sm:$0xff]   ;;  %v1791_v22 = vld [vmem:[#allocation3 + $0x14] sm:$0x1]  ;;  %v4815_v44 = vcombine.low %v1786_v28, %v1790_v5 }
 0x362   : > { %3420 = vmatprep.subr.bf16.mxu0 %v3776_v4  ;;  %v1836_v53 = vrot.slane %v1834_v31, 1  ;;  %v1872_v23 = vrot.slane %v3171_v11, 1  ;;  %v3807_v15 = vld [vmem:[#allocation9 + $0x188] sm:$0xff]   ;;  %v3810_v19 = vld [vmem:[#allocation9 + $0x1d0] sm:$0xff]   ;;  %v3812_v36 = vld [vmem:[#allocation9 + $0x158] sm:$0xff]   ;;  %v4817_v34 = vcombine.low %v1787_v61, %v1791_v22 }
 0x363   : > { %3393 = vmatpush3.bf16.msra.mxu1 %v3775_v43  ;;  %v1844_v37 = vor.u32 %v1843_v0, %v1839_v59  ;;  %v3811_v2 = vld [vmem:[#allocation9 + $0x190] sm:$0xff]   ;;  %v1794_v62 = vld [vmem:[#allocation3 + $0x8] sm:$0xe]  ;;  %v1795_v1 = vld [vmem:[#allocation3 + $0x10] sm:$0xe]  ;;  %v1896_v4 = vshrl.u32 %v4815_v44, 16 }
 0x364   : > { %3394 = vmatprep.subr.bf16.mxu1 %v3778_v48  ;;  %v1837_v3 = vor.u32 %v1836_v53, %v1832_v32  ;;  %v3193_v25 = vcombine.low %v1871_v18, %v1872_v23  ;;  %v3813_v30 = vld [vmem:[#allocation9 + $0x118] sm:$0xff]   ;;  %v3816_v39 = vld [vmem:[#allocation9 + $0x160] sm:$0xff]   ;;  %v3823_v13 = vld [vmem:[#allocation9 + $0x128] sm:$0xff]   ;;  %v1903_v0 = vshrl.u32 %v4817_v34, 16 }
 0x365   : > { %3421 = vmatpush3.bf16.msra.mxu0 %v3777_v27  ;;  %v3814_v33 = vld [vmem:[#allocation9 + $0x1d8] sm:$0xff]   ;;  %v3817_v43 = vld [vmem:[#allocation9 + $0x120] sm:$0xff]   ;;  %v3178_v27 = vcombine.low %v1794_v62, %v1790_v5  ;;  %v3825_v50 = vld [vmem:[#allocation9 + $0x1e8] sm:$0xff]  }
 0x366   : > { %3422 = vmatprep.subr.bf16.mxu0 %v3780_v46  ;;  %v3192_v8 = vcombine.low %v1837_v3, %v1844_v37  ;;  %v3815_v7 = vld [vmem:[#allocation9 + $0x198] sm:$0xff]   ;;  %v3818_v48 = vld [vmem:[#allocation9 + $0x1e0] sm:$0xff]   ;;  %v3179_v46 = vcombine.low %v1795_v1, %v1791_v22  ;;  %v1789_v28 = vld [vmem:[#allocation3 + $0x20] sm:$0xf] }
 0x367   : > { %3395 = vmatpush3.bf16.msra.mxu1 %v3779_v42  ;;  %v1898_v42 = vshll.u32 %v4815_v44, 16  ;;  %v4822_v59 = vld [vmem:[#allocation3 + $0x1c] sm:$0x1]  ;;  %v4824_v24 = vld [vmem:[#allocation3 + $0x24] sm:$0x1]  ;;  %v3836_v62 = vld [vmem:[#allocation9 + $0x178] sm:$0xff]  }
 0x368   : > { %3396 = vmatprep.subr.bf16.mxu1 %v3782_v29  ;;  %2678 = vmatprep.mubr.bf16.mxu1 %v3192_v8  ;;  %v1905_v29 = vshll.u32 %v4817_v34, 16  ;;  %v1936_v47 = vrot.slane %v3179_v46, 1  ;;  %v3829_v6 = vld [vmem:[#allocation9 + $0x1a8] sm:$0xff]   ;;  %v1783_v37 = vld [vmem:[#allocation3 + $0x10] sm:$0xe]  ;;  %v3832_v23 = vld [vmem:[#allocation9 + $0x170] sm:$0xff]  }
 0x369   : > { %3423 = vmatpush3.bf16.msra.mxu0 %v3781_v52  ;;  %v3819_v52 = vld [vmem:[#allocation9 + $0x1a0] sm:$0xff]   ;;  %v1784_v10 = vld [vmem:[#allocation3 + $0x18] sm:$0xe]  ;;  %v3834_v5 = vld [vmem:[#allocation9 + $0x1f0] sm:$0xff]  }
 0x36a   : > { %3424 = vmatprep.subr.bf16.mxu0 %v3784_v20  ;;  %v1775_v20 = vld [vmem:[#allocation3 + $0x10] sm:$0xf]  ;;  %v3837_v1 = vld [vmem:[#allocation9 + $0x138] sm:$0xff]   ;;  %v1804_v46 = vld [vmem:[#allocation3 + $0x1c] sm:$0x1] }
 0x36b   : > { %3397 = vmatpush3.bf16.msra.mxu1 %v3783_v54  ;;  %v3820_v54 = vld [vmem:[#allocation9 + $0x168] sm:$0xff]  }
 0x36c   : > { %3398 = vmatprep.subr.bf16.mxu1 %v3786_v35  ;;  %v1779_v35 = vld [vmem:[#allocation3 + $0x14] sm:$0x1] }
 0x36d   : > { %3425 = vmatpush3.bf16.msra.mxu0 %v3785_v60  ;;  %v1776_v60 = vld [vmem:[#allocation3 + $0x18] sm:$0xf]  ;;  %v3168_v41 = vcombine.low %v1775_v20, %v1779_v35 }
 0x36e   : > { %3426 = vmatprep.subr.bf16.mxu0 %v3788_v38  ;;  %v1935_v38 = vrot.slane %v3178_v27, 1  ;;  %v3200_v8 = vcombine.low %v1775_v20, %v1776_v60  ;;  %v1799_v27 = vld [vmem:[#allocation3 + $0x10] sm:$0xf]  ;;  %v1796_v20 = vld [vmem:[#allocation3 + $0x18] sm:$0xe] }
 0x36f   : > { %3399 = vmatpush3.bf16.msra.mxu1 %v3787_v49  ;;  %v1780_v49 = vld [vmem:[#allocation3 + $0x1c] sm:$0x1]  ;;  %v1846_v55 = vshrl.u32 %v3168_v41, 16 }
 0x370   : > { %3440 = vmatprep.subr.bf16.mxu1 %v3793_v9  ;;  %v3169_v51 = vcombine.low %v1776_v60, %v1780_v49  ;;  %v1788_v9 = vld [vmem:[#allocation3 + $0x18] sm:$0xf]  ;;  %v3173_v18 = vcombine.low %v1784_v10, %v1780_v49  ;;  %v1797_v60 = vld [vmem:[#allocation3 + $0x20] sm:$0xe] }
 0x371   : > { %3427 = vmatpush3.bf16.msra.mxu0 %v3791_v56  ;;  %v1848_v56 = vshll.u32 %v3168_v41, 16  ;;  %v4827_v45 = vcombine.low %v1788_v9, %v4822_v59  ;;  %v3203_v3 = vcombine.low %v1788_v9, %v1789_v28 }
 0x372   : > { %3468 = vmatprep.subr.bf16.mxu0 %v3802_v40  ;;  %2679 = vmatmul.mubr.bf16.vlgmr.msra.gmra.mrb[12].mxu1 %v3191_v58  ;;  %v1853_v32 = vshrl.u32 %v3169_v51, 16  ;;  %v1855_v31 = vshll.u32 %v3169_v51, 16  ;;  %v4830_v40 = vcombine.low %v1789_v28, %v4824_v24  ;;  %v1900_v58 = vrot.slane %v1898_v42, 1  ;;  %v1803_v42 = vld [vmem:[#allocation3 + $0x14] sm:$0x1] }
 0x373   : > { %3441 = vmatpush3.bf16.msra.mxu1 %v3799_v12  ;;  %v1850_v61 = vrot.slane %v1848_v56, 1  ;;  %v1907_v12 = vrot.slane %v1905_v29, 1  ;;  %v3847_v56 = vld [vmem:[#allocation9 + $0x210] sm:$0xff]  }
 0x374   : > { %2728 = vmatmul.mubr.bf16.vlgmr.msra.gmra.mrb[24].mxu0 %v3193_v25  ;;  %3442 = vmatprep.subr.bf16.mxu1 %v3804_v17  ;;  %v1857_v53 = vrot.slane %v1855_v31, 1  ;;  %v3172_v17 = vcombine.low %v1783_v37, %v1779_v35  ;;  %v1919_v25 = vshll.u32 %v4830_v40, 16  ;;  %v1901_v22 = vor.u32 %v1900_v58, %v1896_v4  ;;  %v3840_v4 = vld [vmem:[#allocation9 + $0x200] sm:$0xff]   ;;  %v1802_v31 = vld [vmem:[#allocation3 + $0x28] sm:$0xf] }
 0x375   : > { %3469 = vmatpush3.bf16.msra.mxu0 %v3803_v16  ;;  %v1851_v63 = vor.u32 %v1850_v61, %v1846_v55  ;;  %v1912_v16 = vshll.u32 %v4827_v45, 16  ;;  %2735 = vmatprep.mubr.bf16.mxu0 %v3203_v3  ;;  %v1917_v34 = vshrl.u32 %v4830_v40, 16  ;;  %v3180_v35 = vcombine.low %v1796_v20, %v4822_v59  ;;  %v1805_v61 = vld [vmem:[#allocation3 + $0x24] sm:$0x1] }
 0x376   : > { %3470 = vmatprep.subr.bf16.mxu0 %v3806_v57  ;;  %v1858_v11 = vor.u32 %v1857_v53, %v1853_v32  ;;  %v3833_v57 = vld [vmem:[#allocation9 + $0x130] sm:$0xff]   ;;  %v1921_v44 = vrot.slane %v1919_v25, 1  ;;  %v1806_v53 = vld [vmem:[#allocation3 + $0x2c] sm:$0x1] }
 0x377   : > { %3443 = vmatpush3.bf16.msra.mxu1 %v3805_v26  ;;  %v1937_v55 = vrot.slane %v3180_v35, 1  ;;  %v1801_v32 = vld [vmem:[#allocation3 + $0x20] sm:$0xf]  ;;  %v3185_v40 = vcombine.low %v1802_v31, %v1806_v53 }
 0x378   : > { %3444 = vmatprep.subr.bf16.mxu1 %v3808_v14  ;;  %v3201_v26 = vcombine.low %v1851_v63, %v1858_v11  ;;  %v1873_v14 = vrot.slane %v3172_v17, 1 }
 0x379   : > { %3471 = vmatpush3.bf16.msra.mxu0 %v3807_v15  ;;  %v3196_v15 = vcombine.low %v1935_v38, %v1936_v47  ;;  %v1922_v38 = vor.u32 %v1921_v44, %v1917_v34  ;;  %v1981_v63 = vshrl.u32 %v3185_v40, 16  ;;  %v1983_v11 = vshll.u32 %v3185_v40, 16  ;;  %v3857_v34 = vld [vmem:[#allocation9 + $0x238] sm:$0xff]  }
 0x37a   : > { %3472 = vmatprep.subr.bf16.mxu0 %v3810_v19  ;;  %v3835_v19 = vld [vmem:[#allocation9 + $0x1b0] sm:$0xff]   ;;  %2686 = vmatprep.mubr.bf16.mxu1 %v3201_v26  ;;  %v1808_v26 = vld [vmem:[#allocation3 + $0x18] sm:$0xe] }
 0x37b   : > { %3445 = vmatpush3.bf16.msra.mxu1 %v3809_v21  ;;  %v1874_v21 = vrot.slane %v3173_v18, 1  ;;  %v1985_v17 = vrot.slane %v1983_v11, 1 }
 0x37c   : > { %3446 = vmatprep.subr.bf16.mxu1 %v3812_v36  ;;  %2687 = vmatmul.mubr.bf16.gmra.mrb[16].mxu1 %v3200_v8  ;;  %v3853_v8 = vld [vmem:[#allocation9 + $0x218] sm:$0xff]  }
 0x37d   : > { %3473 = vmatpush3.bf16.msra.mxu0 %v3811_v2  ;;  %v1908_v2 = vor.u32 %v1907_v12, %v1903_v0  ;;  %v3202_v36 = vcombine.low %v1873_v14, %v1874_v21  ;;  %2776 = vmatprep.mubr.bf16.mxu1 %v3196_v15  ;;  %v1986_v25 = vor.u32 %v1985_v17, %v1981_v63 }
 0x37e   : > { %3474 = vmatprep.subr.bf16.mxu0 %v3814_v33  ;;  %v1914_v33 = vrot.slane %v1912_v16, 1  ;;  %v3187_v14 = vcombine.low %v1808_v26, %v1804_v46 }
 0x37f   : > { %3447 = vmatpush3.bf16.msra.mxu1 %v3813_v30  ;;  %v1910_v30 = vshrl.u32 %v4827_v45, 16  ;;  %2736 = vmatmul.mubr.bf16.gmra.mrb[28].mxu0 %v3202_v36  ;;  %v3184_v45 = vcombine.low %v1801_v32, %v1805_v61 }
 0x380   : > { %3448 = vmatprep.subr.bf16.mxu1 %v3816_v39  ;;  %v3839_v39 = vld [vmem:[#allocation9 + $0x1b8] sm:$0xff]  }
 0x381   : > { %3475 = vmatpush3.bf16.msra.mxu0 %v3815_v7  ;;  %v3838_v7 = vld [vmem:[#allocation9 + $0x1f8] sm:$0xff]   ;;  %v1915_v49 = vor.u32 %v1914_v33, %v1910_v30  ;;  %v1974_v58 = vshrl.u32 %v3184_v45, 16 }
 0x382   : > { %3476 = vmatprep.subr.bf16.mxu0 %v3818_v48  ;;  %v1800_v48 = vld [vmem:[#allocation3 + $0x18] sm:$0xf]  ;;  %v1810_v30 = vld [vmem:[#allocation3 + $0x28] sm:$0xe] }
 0x383   : > { %3449 = vmatpush3.bf16.msra.mxu1 %v3817_v43  ;;  %v3195_v43 = vcombine.low %v1901_v22, %v1908_v2  ;;  %v3183_v29 = vcombine.low %v1800_v48, %v1804_v46  ;;  %v3197_v37 = vcombine.low %v1799_v27, %v1800_v48  ;;  %v3206_v22 = vcombine.low %v1801_v32, %v1802_v31  ;;  %v3855_v2 = vld [vmem:[#allocation9 + $0x228] sm:$0xff]  }
 0x384   : > { %3450 = vmatprep.subr.bf16.mxu1 %v3820_v54  ;;  %v3844_v54 = vld [vmem:[#allocation9 + $0x208] sm:$0xff]  }
 0x385   : > { %3477 = vmatpush3.bf16.msra.mxu0 %v3819_v52  ;;  %v3182_v52 = vcombine.low %v1799_v27, %v1803_v42  ;;  %v1969_v47 = vshll.u32 %v3183_v29, 16  ;;  %v3190_v27 = vld [vmem:[%s4926_s4] ss:$0 sm:$0xff] }
 0x386   : > { %3478 = vmatprep.subr.bf16.mxu0 %v3825_v50  ;;  %v3181_v50 = vcombine.low %v1797_v60, %v4824_v24  ;;  %v1976_v24 = vshll.u32 %v3184_v45, 16 }
 0x387   : > { %3451 = vmatpush3.bf16.msra.mxu1 %v3823_v13  ;;  %v1960_v41 = vshrl.u32 %v3182_v52, 16  ;;  %v1962_v51 = vshll.u32 %v3182_v52, 16  ;;  %v1967_v13 = vshrl.u32 %v3183_v29, 16  ;;  %v1971_v28 = vrot.slane %v1969_v47, 1 }
 0x388   : > { %3452 = vmatprep.subr.bf16.mxu1 %v3832_v23  ;;  %v1938_v59 = vrot.slane %v3181_v50, 1  ;;  %v1978_v16 = vrot.slane %v1976_v24, 1  ;;  %v1807_v23 = vld [vmem:[#allocation3 + $0x10] sm:$0xe] }
 0x389   : > { %3479 = vmatpush3.bf16.msra.mxu0 %v3829_v6  ;;  %v1964_v9 = vrot.slane %v1962_v51, 1  ;;  %v1972_v3 = vor.u32 %v1971_v28, %v1967_v13  ;;  %v3204_v6 = vcombine.low %v1915_v49, %v1922_v38  ;;  %v3186_v15 = vcombine.low %v1807_v23, %v1803_v42 }
 0x38a   : > { %3480 = vmatprep.subr.bf16.mxu0 %v3834_v5  ;;  %v3205_v10 = vcombine.low %v1937_v55, %v1938_v59  ;;  %v1979_v18 = vor.u32 %v1978_v16, %v1974_v58 }
 0x38b   : > { %3453 = vmatpush3.bf16.msra.mxu1 %v3833_v57  ;;  %v1965_v0 = vor.u32 %v1964_v9, %v1960_v41  ;;  %v3854_v57 = vld [vmem:[#allocation9 + $0x220] sm:$0xff]   ;;  %v1999_v5 = vrot.slane %v3186_v15, 1 }
 0x38c   : > { %3454 = vmatprep.subr.bf16.mxu1 %v3836_v62  ;;  %v3207_v21 = vcombine.low %v1979_v18, %v1986_v25  ;;  %v1809_v62 = vld [vmem:[#allocation3 + $0x20] sm:$0xe] }
 0x38d   : > { %3481 = vmatpush3.bf16.msra.mxu0 %v3835_v19  ;;  %v3198_v12 = vcombine.low %v1965_v0, %v1972_v3  ;;  %v2000_v19 = vrot.slane %v3187_v14, 1  ;;  %v3188_v33 = vcombine.low %v1809_v62, %v1805_v61 }
 0x38e   : > { %3482 = vmatprep.subr.bf16.mxu0 %v3838_v7  ;;  %v3189_v7 = vcombine.low %v1810_v30, %v1806_v53 }
 0x38f   : > { %3455 = vmatpush3.bf16.msra.mxu1 %v3837_v1  ;;  %2825 = vmatprep.mubr.bf16.mxu0 %v3198_v12  ;;  %v3199_v36 = vcombine.low %v1999_v5, %v2000_v19  ;;  %v3856_v1 = vld [vmem:[#allocation9 + $0x230] sm:$0xff]  }
 0x390   : > { %3526 = vmatprep.subr.bf16.mxu1 %v3840_v4  ;;  %v2002_v44 = vrot.slane %v3189_v7, 1 }
 0x391   : > { %3483 = vmatpush3.bf16.msra.mxu0 %v3839_v39  ;;  %v2001_v39 = vrot.slane %v3188_v33, 1 }
 0x392   : > { %2777 = vmatmul.mubr.bf16.vlgmr.msra.gmra.mrb[20].mxu1 %v3195_v43 }
 0x393   : > { %3527 = vmatpush3.bf16.msra.mxu1 %v3840_v4  ;;  %2784 = vmatprep.mubr.bf16.mxu1 %v3205_v10  ;;  %v3208_v43 = vcombine.low %v2001_v39, %v2002_v44 }
 0x394   : > { %3528 = vmatprep.subr.bf16.mxu1 %v3844_v54  ;;  %2826 = vmatmul.mubr.bf16.vlgmr.msra.gmra.mrb[32].mxu0 %v3197_v37 }
 0x395   : > { %2833 = vmatprep.mubr.bf16.mxu0 %v3207_v21 }
 0x397   : > { %3529 = vmatpush3.bf16.msra.mxu1 %v3844_v54 }
 0x398   : > { %3530 = vmatprep.subr.bf16.mxu1 %v3847_v56 }
 0x39a   : > { %2785 = vmatmul.mubr.bf16.gmra.mrb[24].mxu1 %v3204_v6 }
 0x39b   : > { %3531 = vmatpush3.bf16.msra.mxu1 %v3847_v56  ;;  %3542 = vmatprep.mubr.bf16.mxu1 %v3199_v36 }
 0x39c   : > { %3532 = vmatprep.subr.bf16.mxu1 %v3853_v8  ;;  %2834 = vmatmul.mubr.bf16.gmra.mrb[36].mxu0 %v3206_v22 }
 0x39f   : > { %3533 = vmatpush3.bf16.msra.mxu1 %v3853_v8 }
 0x3a0   : > { %3534 = vmatprep.subr.bf16.mxu1 %v3854_v57 }
 0x3a3   : > { %3535 = vmatpush3.bf16.msra.mxu1 %v3854_v57 }
 0x3a4   : > { %3536 = vmatprep.subr.bf16.mxu1 %v3855_v2 }
 0x3a7   : > { %3537 = vmatpush3.bf16.msra.mxu1 %v3855_v2 }
 0x3a8   : > { %3538 = vmatprep.subr.bf16.mxu1 %v3856_v1 }
 0x3ab   : > { %3539 = vmatpush3.bf16.msra.mxu1 %v3856_v1 }
 0x3ac   : > { %3540 = vmatprep.subr.bf16.mxu1 %v3857_v34 }
 0x3af   : > { %3541 = vmatpush3.bf16.msra.mxu1 %v3857_v34 }
 0x3b2   : > { %3543 = vmatmul.mubr.bf16.vlgmr.msra.gmra.mrb[28].mxu1 %v3208_v43 }
 0x445   : > { %v3400_v4 = vpop.f32.mrb[12].mxu1 }
 0x446   : > { %v3401_v48 = vpop.f32.mrb[13].mxu1 }
 0x447   : > { %v3402_v42 = vadd.f32 %v3401_v48, %v3400_v4  ;;  %v3403_v46 = vpop.f32.mrb[14].mxu1  ;;  %v3428_v52 = vpop.f32.mrb[24].mxu0 }
 0x448   : > { %v3404_v29 = vpop.f32.mrb[15].mxu1  ;;  %v3429_v54 = vpop.f32.mrb[25].mxu0 }
 0x449   : > { %v2681_v20 = vadd.f32 %v3402_v42, %v3190_v27  ;;  %v3405_v60 = vadd.f32 %v3404_v29, %v3403_v46  ;;  %v3430_v35 = vadd.f32 %v3429_v54, %v3428_v52  ;;  %v3431_v49 = vpop.f32.mrb[26].mxu0 }
 0x44a   : > { %v3432_v38 = vpop.f32.mrb[27].mxu0 }
 0x44b   : > { %v2684_v41 = vadd.f32 %v3405_v60, %v3190_v27  ;;  %v2730_v51 = vadd.f32 %v3430_v35, %v2681_v20  ;;  %v3433_v13 = vadd.f32 %v3432_v38, %v3431_v49 }
 0x44d   : > { %v2733_v47 = vadd.f32 %v3433_v13, %v2684_v41 }
 0x44f   : > { %v3406_v50 = vpop.f32.mrb[16].mxu1 }
 0x450   : > { %v3407_v55 = vpop.f32.mrb[17].mxu1 }
 0x451   : > { %v3408_v56 = vadd.f32 %v3407_v55, %v3406_v50  ;;  %v3409_v32 = vpop.f32.mrb[18].mxu1 }
 0x452   : > { %v3434_v31 = vpop.f32.mrb[28].mxu0  ;;  %v3410_v9 = vpop.f32.mrb[19].mxu1 }
 0x453   : > { %v3435_v28 = vpop.f32.mrb[29].mxu0  ;;  %v2689_v61 = vadd.f32 %v3408_v56, %v3190_v27  ;;  %v3411_v53 = vadd.f32 %v3410_v9, %v3409_v32 }
 0x454   : > { %v3436_v59 = vadd.f32 %v3435_v28, %v3434_v31  ;;  %v3437_v45 = vpop.f32.mrb[30].mxu0 }
 0x455   : > { %v3438_v40 = vpop.f32.mrb[31].mxu0  ;;  %v2692_v0 = vadd.f32 %v3411_v53, %v3190_v27 }
 0x456   : > { %v2738_v3 = vadd.f32 %v3436_v59, %v2689_v61  ;;  %v3439_v6 = vadd.f32 %v3438_v40, %v3437_v45 }
 0x458   : > { %v2741_v37 = vadd.f32 %v3439_v6, %v2692_v0 }
 0x465   : > { %v3456_v10 = vpop.f32.mrb[20].mxu1 }
 0x466   : > { %v3457_v58 = vpop.f32.mrb[21].mxu1 }
 0x467   : > { %v3458_v24 = vadd.f32 %v3457_v58, %v3456_v10  ;;  %v3459_v12 = vpop.f32.mrb[22].mxu1  ;;  %v3484_v18 = vpop.f32.mrb[32].mxu0 }
 0x468   : > { %v3460_v63 = vpop.f32.mrb[23].mxu1  ;;  %v3485_v26 = vpop.f32.mrb[33].mxu0 }
 0x469   : > { %v2779_v11 = vadd.f32 %v3458_v24, %v2730_v51  ;;  %v3461_v8 = vadd.f32 %v3460_v63, %v3459_v12  ;;  %v3486_v15 = vadd.f32 %v3485_v26, %v3484_v18  ;;  %v3487_v14 = vpop.f32.mrb[34].mxu0 }
 0x46a   : > { %v3488_v5 = vpop.f32.mrb[35].mxu0 }
 0x46b   : > { %v2782_v16 = vadd.f32 %v3461_v8, %v2733_v47  ;;  %v3489_v2 = vadd.f32 %v3488_v5, %v3487_v14  ;;  %v2828_v36 = vadd.f32 %v3486_v15, %v2779_v11 }
 0x46d   : > { %v3462_v17 = vpop.f32.mrb[24].mxu1  ;;  %v2831_v30 = vadd.f32 %v3489_v2, %v2782_v16 }
 0x46e   : > { %v3463_v23 = vpop.f32.mrb[25].mxu1 }
 0x46f   : > { %v3464_v25 = vadd.f32 %v3463_v23, %v3462_v17  ;;  %v3465_v57 = vpop.f32.mrb[26].mxu1  ;;  %v3490_v1 = vpop.f32.mrb[36].mxu0 }
 0x470   : > { %v3466_v21 = vpop.f32.mrb[27].mxu1  ;;  %v3491_v33 = vpop.f32.mrb[37].mxu0 }
 0x471   : > { %v2787_v19 = vadd.f32 %v3464_v25, %v2738_v3  ;;  %v3467_v22 = vadd.f32 %v3466_v21, %v3465_v57  ;;  %v3492_v7 = vadd.f32 %v3491_v33, %v3490_v1  ;;  %v3493_v34 = vpop.f32.mrb[38].mxu0 }
 0x472   : > { %v3494_v39 = vpop.f32.mrb[39].mxu0 }
 0x473   : > { %v2790_v62 = vadd.f32 %v3467_v22, %v2741_v37  ;;  %v3495_v44 = vadd.f32 %v3494_v39, %v3493_v34  ;;  %v2836_v43 = vadd.f32 %v3492_v7, %v2787_v19 }
 0x475   : > { %v2839_v4 = vadd.f32 %v3495_v44, %v2790_v62 }
 0x485   : > { %v3544_v27 = vpop.f32.mrb[28].mxu1 }
 0x486   : > { %v2885_v48 = vadd.f32 %v3544_v27, %v2836_v43  ;;  %v2876_v42 = vpop.f32.mrb[29].mxu1 }
 0x487   : > { %v2877_v46 = vadd.f32 %v2876_v42, %v2828_v36  ;;  %v3545_v52 = vpop.f32.mrb[30].mxu1 }
 0x488   : > { %v2888_v29 = vadd.f32 %v3545_v52, %v2839_v4  ;;  %v2879_v54 = vpop.f32.mrb[31].mxu1  ;;  %v2893_v60 = vmax.f32 %v2885_v48, 0.0 }
 0x489   : > { %v2880_v20 = vadd.f32 %v2879_v54, %v2831_v30  ;;  %v2891_v49 = vmax.f32 %v2877_v46, 0.0 }
 0x48a   : > { %v2894_v35 = vmax.f32 %v2888_v29, 0.0 }
 0x48b   : > { %v2892_v38 = vmax.f32 %v2880_v20, 0.0 }
 0x48c   : > { %v3306_v41 = vpack.c.bf16 %v2894_v35, %v2893_v60 }
 0x48d   : > { %v3301_v51 = vpack.c.bf16 %v2892_v38, %v2891_v49 }
 0x48e   : > { %3308 = vst [vmem:[%s4471_s30 + $0x8] sm:$0xff] %v3306_v41  }
 0x48f   : > { %3302 = vst [vmem:[%s4471_s30] sm:$0xff] %v3301_v51  }
 0x490   : > { %3959 = shalt.err (!%p3956_p6)
}
 0x491   : > { %s3960_s11 = scalar_lea.hbm %s4853_s13, 256  ;;  %s3964_s12 = scalar_lea.hbm %s4979_s29, 1024 }
 0x492   : > { %p3961_p10 = scmp.ne.s32.totalorder %s4853_s13, %s3960_s11  ;;  %p3965_p3 = scmp.lt.u32.totalorder %s4853_s13, %s4979_s29 }
 0x493   : > { %p3966_p7 = scmp.lt.u32.totalorder %s3964_s12, %s3960_s11  ;;  %p3968_p9 = scmp.lt.u32.totalorder %s3960_s11, %s4853_s13 }
 0x494   : > { %p3962_p1 = pnand %p3961_p10, %p4980_p11 }
 0x495   : > { %p3967_p13 = por %p3966_p7, %p3965_p3 }
 0x496   : > { %p3963_p4 = pneg %p3962_p1 }
 0x497   : > { %p3969_p0 = por %p3968_p9, %p3967_p13 }
 0x499   : > { %p3970_p5 = pnand %p3969_p0, %p3963_p4 }
 0x49b   : > { %3973 = shalt.err (!%p3970_p5)
}
 0x49c   : > { %s4088_s16 = smov 4  }
 0x49d   : > { %3556 = dma.vmem_to_hbm [thread:$0]  (%p4980_p11), %s4848_s17, 256, %s4853_s13, %s4859_s5, %s4080_s8, %s4080_s8, %s4088_s16  }
 0x49e PF: > { %s4981_s24 = sld [smem:[#allocation14_spill]]  ;;  %s4982_s25 = sld [smem:[#allocation17_spill]] }
 0x49f   : > { %p3578_p8 = scmp.ge.s32.totalorder %s4072_s28, 2 }
 0x4a4   : > { %s2934_s18 = sand.u32 1, %s4981_s24   ;;  %p4983_p12 = scmp.ne.s32.totalorder %s4982_s25, 0 }
 0x4a5   : > { %s2935_s7 = scalar_lea.sflag [#allocation6], %s2934_s18 }
 0x4a6   : > { %p3570_p2 = pnand %p3578_p8, %p4983_p12 }
 0x4a8   : > { %4027 = dma.done.wait (!%p3570_p2), %s2935_s7, 256  }
 0x4a9   : > { %4029 = vsyncadd (!%p3570_p2), %s2935_s7, 4294967040  ;;  %s22_s28 = sadd.s32 1, %s4072_s28   ;;  %s4984_s8 = smov %s4295_s21 }
 0x4aa   : > { %p19_p6 = scmp.ge.s32.totalorder %s22_s28, 6   ;;  %s4985_s24 = sld [smem:[#allocation15_spill]] }
 0x4ab   : > { %s4986_s26 = sld [smem:[#allocation18_spill]]  ;;  %s4987_s18 = smov %s4036_s19 }
 0x4ac   : > { %s4988_s19 = smov %s4040_s20  ;;  %s4989_s20 = smov %s4300_s3 }
 0x4ad   : > { %s4990_s21 = smov %s4048_s22  ;;  %s4991_s22 = smov %s4052_s23 }
 0x4ae   : > { %s4992_s23 = smov %s4984_s8  ;;  %s4993_s25 = smov %s4068_s27 }
 0x4af   : > { %s4994_s27 = smov %s5000_s14  ;;  %21 = sbr.rel (!%p19_p6) target bundleno = 14 (0xe), region = 118 }
 0x4b6   :  { %2940 = vsyncpa [#allocation5], 1 }
 0x4b7   :  { %2942 = vsyncpa [#allocation5 + $0x1], 1 }
 0x4b8   :  { %2943 = vsyncpa [#allocation8], 1 }
 0x4b9   :  { %2944 = vsyncpa [#allocation6], 1 }
 0x4ba   :  { %2946 = vsyncpa [#allocation6 + $0x1], 1 }

</bundles_post_ra>
